<compile_context>
chip_gen: v7x
topology: tpu7x:2x2x1
jax: 0.10.0
libtpu: 0.0.40
codegen_flags: <defaults>
</compile_context>

<pallas_src>
import functools

import jax
import jax.numpy as jnp
from jax.experimental import pallas as pl
from jax.experimental.pallas import tpu as pltpu

Z_RATIO = 0.8
LN_EPS = 1e-5
# MXU-operand dtype (bf16-native MXUs on v5e/v6e/v7x; f32 dots are multi-pass).
# Accumulation / LN stats / elementwise math stay f32.
DOT_DTYPE = jnp.bfloat16


# --------------------------------------------------------------------------
# Fused Pallas kernel: one grid step == one GLASSConv layer for ALL subgraphs
# --------------------------------------------------------------------------
def _embzg_fused_kernel(x0_ref, memb_ref, e_ref, adj_ref, m1_ref,
                        wx_ref, bt_ref, wcl_ref, bc_ref, g_ref, be_ref,
                        o_ref, coef_ref, *, bh):
    """Activations live in the lane-dense (N, B*H) output block, resident in VMEM."""
    @pl.when(pl.program_id(0) == 0)
    def _():
        # Seed the resident activation with the (embedded + LayerNorm'd) node
        # features, already repeated over the B lane groups.  Kept even though
        # x_init is aliased to the output HBM buffer: Pallas does not preload
        # aliased output windows into VMEM, so this explicit read is required.
        o_ref[...] = x0_ref[...]
        # Expand the compact (N, B) membership coefficients (z inside the subgraph,
        # 1-z outside) to the lane-folded (N, B*H) layout once; reused every layer
        # from VMEM scratch.  e_ref is a 0/1 selection matrix, so this is exact.
        coef_ref[...] = jnp.dot(memb_ref[...], e_ref[...],
                                preferred_element_type=jnp.float32)

    x = o_ref[...]                       # (N, B*H) f32, current layer input
    a = coef_ref[...]                    # (N, B*H) mixing coefficient
    xd = x.astype(DOT_DTYPE)

    # trans_fns[0] | trans_fns[1] | comb_fns x-partial — all share the same LHS, so
    # they are ONE bf16 MXU dot against the merged block-diagonal weight (BH, 4*BH).
    xw = jnp.dot(xd, wx_ref[...], preferred_element_type=jnp.float32)   # (N, 4*B*H)
    xt = jnp.maximum(xw[:, :2 * bh] + bt_ref[...], 0.0)                 # ReLU(trans)
    x0 = xt[:, :bh]
    x1 = xt[:, bh:]
    mixed = x0 + a * (x1 - x0)           # == (1-a)*x0 + a*x1

    # spmm_mean: adjacency rows were pre-scaled by 1/#neighbours outside the kernel.
    agg = jnp.dot(adj_ref[...], mixed.astype(DOT_DTYPE),
                  preferred_element_type=jnp.float32)                   # (N, B*H)

    # Per-(node, subgraph) LayerNorm over each H-lane group via the constant
    # group-mean matrix m1 = kron(I_B, 1/H).  Stats stay f32 for accuracy; the
    # E[x^2] - mu^2 form lets both stat dots issue back-to-back.
    mu = jnp.dot(agg, m1_ref[...], preferred_element_type=jnp.float32)
    ex2 = jnp.dot(agg * agg, m1_ref[...], preferred_element_type=jnp.float32)
    var = ex2 - mu * mu
    ln = (agg - mu) * jax.lax.rsqrt(var + LN_EPS) * g_ref[...] + be_ref[...]
    # TODO(synk): F.dropout after gn is identity at inference; training-mode dropout
    # masks are not implemented.

    # comb_fns on cat([ln, x]): the x-contribution was already produced by the merged
    # dot above (xw[:, 2*bh:]); only the ln-contribution needs a fresh MXU dot.
    yt = (jnp.dot(ln.astype(DOT_DTYPE), wcl_ref[...],
                  preferred_element_type=jnp.float32)
          + xw[:, 2 * bh:] + bc_ref[...])                               # (N, 2*B*H)
    y0 = yt[:, :bh]
    y1 = yt[:, bh:]
    y = y0 + a * (y1 - y0)

    # EmbZGConv residual: x_{l+1} = conv_l(x_l) + x_l
    o_ref[...] = y + x


def _vmem_limit_bytes(n_node, bh, num_layers):
    """Shape-derived scoped-VMEM request (instead of a hard-coded constant)."""
    f32 = 4
    dot = jnp.dtype(DOT_DTYPE).itemsize
    invariants = (n_node * bh * f32                      # x_init (single-buffered)
                  + n_node * 128 * f32                   # membership (lane-padded)
                  + 8 * bh * f32                         # selection matrix (padded)
                  + n_node * max(n_node, 128) * dot      # adjacency (lane-padded)
                  + bh * bh * f32)                       # LN group-mean matrix
    per_layer_w = (bh * 4 * bh + bh * 2 * bh) * dot + (2 * bh + 2 * bh + 2 * bh) * f32
    resident = 2 * n_node * bh * f32                     # out block + coef scratch
    work = 8 * n_node * bh * f32                         # in-flight intermediates
    est = invariants + 2 * per_layer_w + resident + work # x2: weight double-buffers
    # 2x margin, floored at the 32 MiB scoped default, capped at 64 MiB so the same
    # request is legal on v7x.  On v5e/v6e (128 MiB physical) the cap could be raised
    # toward ~100 MiB for large N before row tiling becomes necessary.
    return int(min(max(2 * est, 32 * 2**20), 64 * 2**20))


def _embzg_pallas(x_init, memb, e_mat, adj_norm, m1, packed, *,
                  single_buffer_invariants=True):
    n_node, bh = x_init.shape
    num_subg = memb.shape[1]
    num_layers = packed["wx"].shape[0]
    kern = functools.partial(_embzg_fused_kernel, bh=bh)
    inv = lambda l: (0, 0)             # grid-invariant 2-D blocks (DMA'd once)
    per_layer = lambda l: (l, 0, 0)    # per-layer stacked weights
    # Grid-invariant inputs never change block index, so the second pipeline buffer
    # is pure VMEM waste — request a single buffer.  Per-layer weights keep the
    # default double-buffering so their DMA overlaps the previous layer's compute.
    inv_kw = dict(pipeline_mode=pl.Buffered(1)) if single_buffer_invariants else {}
    # TODO(synk): for large N, row-tile the (N, N) adjacency with an extra "parallel"
    # node-row grid axis (>=128-row tiles, 256 for bf16) — this both bounds VMEM and
    # lets v7x's two TensorCores share the spmm.  Not needed at these demo shapes.
    return pl.pallas_call(
        kern,
        out_shape=jax.ShapeDtypeStruct((n_node, bh), jnp.float32),
        grid=(num_layers,),
        in_specs=[
            pl.BlockSpec((n_node, bh), inv, **inv_kw),        # x_init (N, B*H)
            pl.BlockSpec((n_node, num_subg), inv, **inv_kw),  # compact membership (N, B)
            pl.BlockSpec((num_subg, bh), inv, **inv_kw),      # lane-expansion (B, B*H)
            pl.BlockSpec((n_node, n_node), inv, **inv_kw),    # pre-normalised adjacency
            pl.BlockSpec((bh, bh), inv, **inv_kw),            # LN group-mean matrix
            pl.BlockSpec((None, bh, 4 * bh), per_layer),      # merged trans|comb-x W
            pl.BlockSpec((None, 1, 2 * bh), per_layer),       # packed trans bias
            pl.BlockSpec((None, bh, 2 * bh), per_layer),      # packed comb W (ln part)
            pl.BlockSpec((None, 1, 2 * bh), per_layer),       # packed comb bias
            pl.BlockSpec((None, 1, bh), per_layer),           # LayerNorm gamma (tiled)
            pl.BlockSpec((None, 1, bh), per_layer),           # LayerNorm beta (tiled)
        ],
        out_specs=pl.BlockSpec((n_node, bh), inv),            # resident across layers
        scratch_shapes=[pltpu.VMEM((n_node, bh), jnp.float32)],  # expanded mix coeff
        input_output_aliases={0: 0},                          # reuse x_init's HBM buf
        compiler_params=pltpu.CompilerParams(
            dimension_semantics=("arbitrary",),               # layers are sequential
            vmem_limit_bytes=_vmem_limit_bytes(n_node, bh, num_layers)),
    )(x_init, memb, e_mat, adj_norm, m1,
      packed["wx"], packed["bt"], packed["wcl"], packed["bc"],
      packed["g"], packed["be"])


# --------------------------------------------------------------------------
# Parameter packing (done once, outside the kernel)
# --------------------------------------------------------------------------
def pack_params(params, num_subg):
    """Pack per-layer GLASSConv weights into the lane-folded block-diagonal form.

    TODO(synk): kron(I_B, W) costs Bx extra MXU FLOPs and B^2x weight bytes; fine at
    B=4/H=32 but for larger B fold B into the row dimension for the dense dots and
    keep the lane-folded layout only around the spmm.
    """
    h = params["layers"][0]["w0"].shape[0]
    eye_b = jnp.eye(num_subg, dtype=jnp.float32)

    def bd(w):                                    # (H, X) -> (B*H, B*X) block diag
        return jnp.kron(eye_b, w)

    def tile_b(v):                                # (1, X) -> (1, B*X)
        return jnp.tile(v, (1, num_subg))

    wx, bt, wcl, bc, g, be = [], [], [], [], [], []
    for p in params["layers"]:
        wt = jnp.concatenate([bd(p["w0"]), bd(p["w1"])], axis=1)            # (BH, 2BH)
        wcx = jnp.concatenate([bd(p["wc0"][h:]), bd(p["wc1"][h:])], axis=1)  # (BH, 2BH)
        wx.append(jnp.concatenate([wt, wcx], axis=1))                       # (BH, 4BH)
        bt.append(jnp.concatenate([tile_b(p["b0"]), tile_b(p["b1"])], axis=1))
        wcl.append(jnp.concatenate([bd(p["wc0"][:h]), bd(p["wc1"][:h])], axis=1))
        bc.append(jnp.concatenate([tile_b(p["bc0"]), tile_b(p["bc1"])], axis=1))
        g.append(tile_b(p["g"]))
        be.append(tile_b(p["be"]))
    return dict(
        wx=jnp.stack(wx).astype(DOT_DTYPE),        # bf16 MXU operands
        bt=jnp.stack(bt).astype(jnp.float32),
        wcl=jnp.stack(wcl).astype(DOT_DTYPE),
        bc=jnp.stack(bc).astype(jnp.float32),
        g=jnp.stack(g).astype(jnp.float32),
        be=jnp.stack(be).astype(jnp.float32),
    )


def _layernorm(x, g, b):
    mu = jnp.mean(x, axis=-1, keepdims=True)
    var = jnp.mean((x - mu) ** 2, axis=-1, keepdims=True)
    return (x - mu) * jax.lax.rsqrt(var + LN_EPS) * g + b


def embzg_forward(x_int, adj, dinv, mask, params):
    """Full EmbZGConv forward; embedding / layout glue in JAX, hot path fused in Pallas."""
    num_subg, num_node = mask.shape
    hidden = params["emb_table"].shape[1]

    # input_emb + post_emb (LayerNorm; Dropout is identity at inference)
    h = params["emb_table"][x_int]                            # (N, H)
    h = _layernorm(h, params["post_g"], params["post_b"])

    # lane-folded layout: lane index = subgraph * H + channel
    x_init = jnp.tile(h, (1, num_subg)).astype(jnp.float32)   # (N, B*H)

    # compact mixing coefficient (N, B): z inside the subgraph, 1-z outside; expanded
    # in-kernel (layer 0) to the lane-folded (N, B*H) layout via a 0/1 selection matmul.
    memb = jnp.where(mask.T > 0, Z_RATIO, 1.0 - Z_RATIO).astype(jnp.float32)
    e_mat = jnp.kron(jnp.eye(num_subg, dtype=jnp.float32),
                     jnp.ones((1, hidden), jnp.float32))      # (B, B*H)

    adj_norm = (adj * dinv).astype(DOT_DTYPE)                 # fold spmm_mean 1/deg once
    m1 = jnp.kron(jnp.eye(num_subg, dtype=jnp.float32),
                  jnp.full((hidden, hidden), 1.0 / hidden, jnp.float32))  # f32 (LN stats)

    packed = pack_params(params, num_subg)
    try:
        out = _embzg_pallas(x_init, memb, e_mat, adj_norm, m1, packed,
                            single_buffer_invariants=True)
    except Exception:
        # pl.Buffered(1) (single-buffered invariant inputs) unsupported on this jax
        # version/backend -> identical kernel with default double-buffering.
        out = _embzg_pallas(x_init, memb, e_mat, adj_norm, m1, packed,
                            single_buffer_invariants=False)

    # back to the module's (num_subg, num_node, channels) layout
    return out.reshape(num_node, num_subg, hidden).transpose(1, 0, 2)


# --------------------------------------------------------------------------
# Pure-JAX reference (same math, no Pallas) for correctness checks
# --------------------------------------------------------------------------
def embzg_reference(x_int, adj, dinv, mask, params, dot_dtype=jnp.float32):
    """dot_dtype mirrors the kernel's MXU-operand dtype for a tight bf16 check;
    dot_dtype=float32 gives the exact module math."""
    z = Z_RATIO
    num_subg = mask.shape[0]
    h = params["emb_table"][x_int]
    h = _layernorm(h, params["post_g"], params["post_b"])
    x = jnp.broadcast_to(h[None], (num_subg,) + h.shape)
    m = mask[:, :, None] > 0
    adj_n = (adj * dinv).astype(dot_dtype)                    # spmm_mean, 1/deg folded

    def dot(a, b):
        return jnp.dot(a.astype(dot_dtype), b.astype(dot_dtype),
                       preferred_element_type=jnp.float32)

    for p in params["layers"]:
        x_ = x
        x0 = jax.nn.relu(dot(x_, p["w0"]) + p["b0"])
        x1 = jax.nn.relu(dot(x_, p["w1"]) + p["b1"])
        mixed = jnp.where(m, z * x1 + (1 - z) * x0, z * x0 + (1 - z) * x1)
        agg = jnp.einsum("ij,bjc->bic", adj_n, mixed.astype(dot_dtype),
                         preferred_element_type=jnp.float32)
        ln = _layernorm(agg, p["g"], p["be"])
        cat = jnp.concatenate([ln, x_], axis=-1)
        y0 = dot(cat, p["wc0"]) + p["bc0"]
        y1 = dot(cat, p["wc1"]) + p["bc1"]
        y = jnp.where(m, z * y1 + (1 - z) * y0, z * y0 + (1 - z) * y1)
        x = y + x_
    return x


# --------------------------------------------------------------------------
# Main
# --------------------------------------------------------------------------
if __name__ == "__main__":
    key = jax.random.PRNGKey(0)

    N = 16          # num_node
    B = 4           # num_subg
    H = 32          # hidden_channels == output_channels (residual requires equality)
    MAX_DEG = 4
    NUM_LAYERS = 2

    def nrm(k, shape, scale=0.1):
        return scale * jax.random.normal(k, shape, dtype=jnp.float32)

    keys = jax.random.split(key, 32)
    ki = iter(keys)

    # graph: bidirectional ring, positive edge weights
    src = jnp.arange(N, dtype=jnp.int32)
    dst = (src + 1) % N
    edge_index = jnp.concatenate(
        [jnp.stack([src, dst]), jnp.stack([dst, src])], axis=1)      # (2, 2N)
    edge_weight = 0.5 + jax.random.uniform(next(ki), (2 * N,), dtype=jnp.float32)

    # buildAdj -> dense adjacency (scatter-add so duplicate edges accumulate) +
    # per-row neighbour counts for spmm_mean
    adj = jnp.zeros((N, N), jnp.float32).at[edge_index[0], edge_index[1]].add(edge_weight)
    deg = jnp.zeros((N,), jnp.float32).at[edge_index[0]].add(1.0)
    dinv = (1.0 / jnp.maximum(deg, 1.0))[:, None]                    # (N, 1)

    # node2subg membership mask (each subgraph guaranteed non-empty)
    mask = (jax.random.uniform(next(ki), (B, N)) > 0.5)
    mask = mask.at[jnp.arange(B), jnp.arange(B)].set(True)
    mask = mask.astype(jnp.float32)

    # integer node features (degrees) in [0, MAX_DEG]
    x_int = jax.random.randint(next(ki), (N,), 0, MAX_DEG + 1)

    # deterministic parameters (shapes from the module's __init__)
    layers = []
    for _ in range(NUM_LAYERS):
        layers.append(dict(
            w0=nrm(next(ki), (H, H)), b0=nrm(next(ki), (1, H)),
            w1=nrm(next(ki), (H, H)), b1=nrm(next(ki), (1, H)),
            wc0=nrm(next(ki), (2 * H, H)), bc0=nrm(next(ki), (1, H)),
            wc1=nrm(next(ki), (2 * H, H)), bc1=nrm(next(ki), (1, H)),
            g=jnp.ones((1, H), jnp.float32), be=jnp.zeros((1, H), jnp.float32),
        ))
    params = dict(
        emb_table=nrm(next(ki), (MAX_DEG + 1, H), scale=1.0),
        post_g=jnp.ones((H,), jnp.float32),
        post_b=jnp.zeros((H,), jnp.float32),
        layers=layers,
    )

    out = embzg_forward(x_int, adj, dinv, mask, params)
    out = jax.block_until_ready(out)
    assert out.shape == (B, N, H), out.shape

    # Tight check: reference that mirrors the kernel's bf16 MXU operands (f32 accum).
    # Tolerance covers summation-order differences and rare bf16 rounding-boundary
    # divergences between the two formulations.
    ref_dot = embzg_reference(x_int, adj, dinv, mask, params, dot_dtype=DOT_DTYPE)
    err_dot = jnp.max(jnp.abs(out - ref_dot))
    assert jnp.allclose(out, ref_dot, atol=1e-2, rtol=1e-2), \
        f"max abs err vs dtype-faithful ref {err_dot}"

    # Sanity check: against the pure-f32 module math (difference is only the bf16
    # operand rounding introduced for MXU throughput).
    ref_f32 = embzg_reference(x_int, adj, dinv, mask, params, dot_dtype=jnp.float32)
    rel = jnp.sqrt(jnp.sum((out - ref_f32) ** 2) / jnp.sum(ref_f32 ** 2))
    assert rel < 5e-2, f"relative error vs f32 reference {rel}"

    print("KERNEL_OK")
</pallas_src>

<mosaic_0001>
module attributes {stable_mosaic.version = 11 : i64} {
  func.func @_embzg_fused_kernel(%arg0: i32, %arg1: memref<16x128xf32, #tpu.memory_space<vmem>>, %arg2: memref<16x4xf32, #tpu.memory_space<vmem>>, %arg3: memref<4x128xf32, #tpu.memory_space<vmem>>, %arg4: memref<16x16xbf16, #tpu.memory_space<vmem>>, %arg5: memref<128x128xf32, #tpu.memory_space<vmem>>, %arg6: memref<1x128x512xbf16, #tpu.memory_space<vmem>>, %arg7: memref<1x1x256xf32, #tpu.memory_space<vmem>>, %arg8: memref<1x128x256xbf16, #tpu.memory_space<vmem>>, %arg9: memref<1x1x256xf32, #tpu.memory_space<vmem>>, %arg10: memref<1x1x128xf32, #tpu.memory_space<vmem>>, %arg11: memref<1x1x128xf32, #tpu.memory_space<vmem>>, %arg12: memref<16x128xf32, #tpu.memory_space<vmem>>, %arg13: memref<16x128xf32, #tpu.memory_space<vmem>>) attributes {dimension_semantics = [#tpu.dimension_semantics<arbitrary>], iteration_bounds = array<i64: 2>, scalar_prefetch = 0 : i64, scratch_operands = 1 : i64, tpu.core_type = #tpu.core_type<tc>, window_params = [{pipeline_mode = #tpu.pipeline_mode<synchronous>, transform_indices = @transform_0, window_bounds = array<i64: 16, 128>}, {pipeline_mode = #tpu.pipeline_mode<synchronous>, transform_indices = @transform_1, window_bounds = array<i64: 16, 4>}, {pipeline_mode = #tpu.pipeline_mode<synchronous>, transform_indices = @transform_2, window_bounds = array<i64: 4, 128>}, {pipeline_mode = #tpu.pipeline_mode<synchronous>, transform_indices = @transform_3, window_bounds = array<i64: 16, 16>}, {pipeline_mode = #tpu.pipeline_mode<synchronous>, transform_indices = @transform_4, window_bounds = array<i64: 128, 128>}, {transform_indices = @transform_5, window_bounds = array<i64: 1, 128, 512>}, {transform_indices = @transform_6, window_bounds = array<i64: 1, 1, 256>}, {transform_indices = @transform_7, window_bounds = array<i64: 1, 128, 256>}, {transform_indices = @transform_8, window_bounds = array<i64: 1, 1, 256>}, {transform_indices = @transform_9, window_bounds = array<i64: 1, 1, 128>}, {transform_indices = @transform_10, window_bounds = array<i64: 1, 1, 128>}, {pipeline_mode = #tpu.pipeline_mode<synchronous>, transform_indices = @transform_11, window_bounds = array<i64: 16, 128>}]} {
    %c0_i32 = arith.constant 0 : i32
    %0 = arith.cmpi eq, %arg0, %c0_i32 : i32
    %1 = arith.extui %0 : i1 to i32
    %c0_i32_0 = arith.constant 0 : i32
    %2 = arith.cmpi ne, %1, %c0_i32_0 : i32
    scf.if %2 {
      %c0_36 = arith.constant 0 : index
      %c0_37 = arith.constant 0 : index
      %61 = vector.load %arg1[%c0_36, %c0_37] : memref<16x128xf32, #tpu.memory_space<vmem>>, vector<16x128xf32>
      %c0_38 = arith.constant 0 : index
      %c0_39 = arith.constant 0 : index
      %62 = vector.load %arg12[%c0_38, %c0_39] : memref<16x128xf32, #tpu.memory_space<vmem>>, vector<16x128xf32>
      tpu.vector_store %arg12[%c0_38, %c0_39], %61 {strides = array<i32>} : memref<16x128xf32, #tpu.memory_space<vmem>>, vector<16x128xf32>,
      %c0_40 = arith.constant 0 : index
      %c0_41 = arith.constant 0 : index
      %63 = vector.load %arg2[%c0_40, %c0_41] : memref<16x4xf32, #tpu.memory_space<vmem>>, vector<16x4xf32>
      %c0_42 = arith.constant 0 : index
      %c0_43 = arith.constant 0 : index
      %64 = vector.load %arg3[%c0_42, %c0_43] : memref<4x128xf32, #tpu.memory_space<vmem>>, vector<4x128xf32>
      %cst_44 = arith.constant dense<0.000000e+00> : vector<16x128xf32>
      %65 = tpu.matmul %63, %64, %cst_44 {dimension_numbers = #tpu.dot_dimension_numbers<[1], [0], [0], [1], [0, 0, 1, 1], [], []>} : vector<16x4xf32>, vector<4x128xf32>, vector<16x128xf32> -> vector<16x128xf32>
      %c0_45 = arith.constant 0 : index
      %c0_46 = arith.constant 0 : index
      %66 = vector.load %arg13[%c0_45, %c0_46] : memref<16x128xf32, #tpu.memory_space<vmem>>, vector<16x128xf32>
      tpu.vector_store %arg13[%c0_45, %c0_46], %65 {strides = array<i32>} : memref<16x128xf32, #tpu.memory_space<vmem>>, vector<16x128xf32>,
    } else {
    }
    %c0 = arith.constant 0 : index
    %c0_1 = arith.constant 0 : index
    %3 = vector.load %arg12[%c0, %c0_1] : memref<16x128xf32, #tpu.memory_space<vmem>>, vector<16x128xf32>
    %c0_2 = arith.constant 0 : index
    %c0_3 = arith.constant 0 : index
    %4 = vector.load %arg13[%c0_2, %c0_3] : memref<16x128xf32, #tpu.memory_space<vmem>>, vector<16x128xf32>
    %5 = arith.truncf %3 : vector<16x128xf32> to vector<16x128xbf16>
    %c0_4 = arith.constant 0 : index
    %c0_5 = arith.constant 0 : index
    %c0_6 = arith.constant 0 : index
    %6 = vector.load %arg6[%c0_4, %c0_5, %c0_6] : memref<1x128x512xbf16, #tpu.memory_space<vmem>>, vector<1x128x512xbf16>
    %7 = vector.shape_cast %6 : vector<1x128x512xbf16> to vector<128x512xbf16>
    %cst = arith.constant dense<0.000000e+00> : vector<16x512xf32>
    %8 = tpu.matmul %5, %7, %cst {dimension_numbers = #tpu.dot_dimension_numbers<[1], [0], [0], [1], [0, 0, 1, 1], [], []>} : vector<16x128xbf16>, vector<128x512xbf16>, vector<16x512xf32> -> vector<16x512xf32>
    %9 = vector.extract_strided_slice %8 {offsets = [0, 0], sizes = [16, 256], strides = [1, 1]} : vector<16x512xf32> to vector<16x256xf32>
    %c0_7 = arith.constant 0 : index
    %c0_8 = arith.constant 0 : index
    %c0_9 = arith.constant 0 : index
    %10 = vector.load %arg7[%c0_7, %c0_8, %c0_9] : memref<1x1x256xf32, #tpu.memory_space<vmem>>, vector<1x1x256xf32>
    %11 = vector.shape_cast %10 : vector<1x1x256xf32> to vector<1x256xf32>
    %12 = vector.broadcast %11 : vector<1x256xf32> to vector<16x256xf32>
    %13 = arith.addf %9, %12 : vector<16x256xf32>
    %cst_10 = arith.constant 0.000000e+00 : f32
    %14 = vector.broadcast %cst_10 : f32 to vector<16x256xf32>
    %15 = arith.maximumf %13, %14 : vector<16x256xf32>
    %16 = vector.extract_strided_slice %15 {offsets = [0, 0], sizes = [16, 128], strides = [1, 1]} : vector<16x256xf32> to vector<16x128xf32>
    %17 = vector.extract_strided_slice %15 {offsets = [0, 128], sizes = [16, 128], strides = [1, 1]} : vector<16x256xf32> to vector<16x128xf32>
    %18 = arith.subf %17, %16 : vector<16x128xf32>
    %19 = arith.mulf %4, %18 : vector<16x128xf32>
    %20 = arith.addf %16, %19 : vector<16x128xf32>
    %c0_11 = arith.constant 0 : index
    %c0_12 = arith.constant 0 : index
    %21 = vector.load %arg4[%c0_11, %c0_12] : memref<16x16xbf16, #tpu.memory_space<vmem>>, vector<16x16xbf16>
    %22 = arith.truncf %20 : vector<16x128xf32> to vector<16x128xbf16>
    %cst_13 = arith.constant dense<0.000000e+00> : vector<16x128xf32>
    %23 = tpu.matmul %21, %22, %cst_13 {dimension_numbers = #tpu.dot_dimension_numbers<[1], [0], [0], [1], [0, 0, 1, 1], [], []>} : vector<16x16xbf16>, vector<16x128xbf16>, vector<16x128xf32> -> vector<16x128xf32>
    %c0_14 = arith.constant 0 : index
    %c0_15 = arith.constant 0 : index
    %24 = vector.load %arg5[%c0_14, %c0_15] : memref<128x128xf32, #tpu.memory_space<vmem>>, vector<128x128xf32>
    %cst_16 = arith.constant dense<0.000000e+00> : vector<16x128xf32>
    %25 = tpu.matmul %23, %24, %cst_16 {dimension_numbers = #tpu.dot_dimension_numbers<[1], [0], [0], [1], [0, 0, 1, 1], [], []>} : vector<16x128xf32>, vector<128x128xf32>, vector<16x128xf32> -> vector<16x128xf32>
    %26 = arith.mulf %23, %23 : vector<16x128xf32>
    %c0_17 = arith.constant 0 : index
    %c0_18 = arith.constant 0 : index
    %27 = vector.load %arg5[%c0_17, %c0_18] : memref<128x128xf32, #tpu.memory_space<vmem>>, vector<128x128xf32>
    %cst_19 = arith.constant dense<0.000000e+00> : vector<16x128xf32>
    %28 = tpu.matmul %26, %27, %cst_19 {dimension_numbers = #tpu.dot_dimension_numbers<[1], [0], [0], [1], [0, 0, 1, 1], [], []>} : vector<16x128xf32>, vector<128x128xf32>, vector<16x128xf32> -> vector<16x128xf32>
    %29 = arith.mulf %25, %25 : vector<16x128xf32>
    %30 = arith.subf %28, %29 : vector<16x128xf32>
    %31 = arith.subf %23, %25 : vector<16x128xf32>
    %cst_20 = arith.constant 9.99999974E-6 : f32
    %32 = vector.broadcast %cst_20 : f32 to vector<16x128xf32>
    %33 = arith.addf %30, %32 : vector<16x128xf32>
    %34 = math.rsqrt %33 : vector<16x128xf32>
    %35 = arith.mulf %31, %34 : vector<16x128xf32>
    %c0_21 = arith.constant 0 : index
    %c0_22 = arith.constant 0 : index
    %c0_23 = arith.constant 0 : index
    %36 = vector.load %arg10[%c0_21, %c0_22, %c0_23] : memref<1x1x128xf32, #tpu.memory_space<vmem>>, vector<1x1x128xf32>
    %37 = vector.shape_cast %36 : vector<1x1x128xf32> to vector<1x128xf32>
    %38 = vector.broadcast %37 : vector<1x128xf32> to vector<16x128xf32>
    %39 = arith.mulf %35, %38 : vector<16x128xf32>
    %c0_24 = arith.constant 0 : index
    %c0_25 = arith.constant 0 : index
    %c0_26 = arith.constant 0 : index
    %40 = vector.load %arg11[%c0_24, %c0_25, %c0_26] : memref<1x1x128xf32, #tpu.memory_space<vmem>>, vector<1x1x128xf32>
    %41 = vector.shape_cast %40 : vector<1x1x128xf32> to vector<1x128xf32>
    %42 = vector.broadcast %41 : vector<1x128xf32> to vector<16x128xf32>
    %43 = arith.addf %39, %42 : vector<16x128xf32>
    %44 = arith.truncf %43 : vector<16x128xf32> to vector<16x128xbf16>
    %c0_27 = arith.constant 0 : index
    %c0_28 = arith.constant 0 : index
    %c0_29 = arith.constant 0 : index
    %45 = vector.load %arg8[%c0_27, %c0_28, %c0_29] : memref<1x128x256xbf16, #tpu.memory_space<vmem>>, vector<1x128x256xbf16>
    %46 = vector.shape_cast %45 : vector<1x128x256xbf16> to vector<128x256xbf16>
    %cst_30 = arith.constant dense<0.000000e+00> : vector<16x256xf32>
    %47 = tpu.matmul %44, %46, %cst_30 {dimension_numbers = #tpu.dot_dimension_numbers<[1], [0], [0], [1], [0, 0, 1, 1], [], []>} : vector<16x128xbf16>, vector<128x256xbf16>, vector<16x256xf32> -> vector<16x256xf32>
    %48 = vector.extract_strided_slice %8 {offsets = [0, 256], sizes = [16, 256], strides = [1, 1]} : vector<16x512xf32> to vector<16x256xf32>
    %49 = arith.addf %47, %48 : vector<16x256xf32>
    %c0_31 = arith.constant 0 : index
    %c0_32 = arith.constant 0 : index
    %c0_33 = arith.constant 0 : index
    %50 = vector.load %arg9[%c0_31, %c0_32, %c0_33] : memref<1x1x256xf32, #tpu.memory_space<vmem>>, vector<1x1x256xf32>
    %51 = vector.shape_cast %50 : vector<1x1x256xf32> to vector<1x256xf32>
    %52 = vector.broadcast %51 : vector<1x256xf32> to vector<16x256xf32>
    %53 = arith.addf %49, %52 : vector<16x256xf32>
    %54 = vector.extract_strided_slice %53 {offsets = [0, 0], sizes = [16, 128], strides = [1, 1]} : vector<16x256xf32> to vector<16x128xf32>
    %55 = vector.extract_strided_slice %53 {offsets = [0, 128], sizes = [16, 128], strides = [1, 1]} : vector<16x256xf32> to vector<16x128xf32>
    %56 = arith.subf %55, %54 : vector<16x128xf32>
    %57 = arith.mulf %4, %56 : vector<16x128xf32>
    %58 = arith.addf %54, %57 : vector<16x128xf32>
    %59 = arith.addf %58, %3 : vector<16x128xf32>
    %c0_34 = arith.constant 0 : index
    %c0_35 = arith.constant 0 : index
    %60 = vector.load %arg12[%c0_34, %c0_35] : memref<16x128xf32, #tpu.memory_space<vmem>>, vector<16x128xf32>
    tpu.vector_store %arg12[%c0_34, %c0_35], %59 {strides = array<i32>} : memref<16x128xf32, #tpu.memory_space<vmem>>, vector<16x128xf32>,
    return
  }
  func.func @transform_0(%arg0: i32) -> (i32, i32) {
    %c0_i32 = arith.constant 0 : i32
    %c0_i32_0 = arith.constant 0 : i32
    %c0_i32_1 = arith.constant 0 : i32
    return %c0_i32, %c0_i32_0 : i32, i32
  }
  func.func @transform_1(%arg0: i32) -> (i32, i32) {
    %c0_i32 = arith.constant 0 : i32
    %c0_i32_0 = arith.constant 0 : i32
    %c0_i32_1 = arith.constant 0 : i32
    return %c0_i32, %c0_i32_0 : i32, i32
  }
  func.func @transform_2(%arg0: i32) -> (i32, i32) {
    %c0_i32 = arith.constant 0 : i32
    %c0_i32_0 = arith.constant 0 : i32
    %c0_i32_1 = arith.constant 0 : i32
    return %c0_i32, %c0_i32_0 : i32, i32
  }
  func.func @transform_3(%arg0: i32) -> (i32, i32) {
    %c0_i32 = arith.constant 0 : i32
    %c0_i32_0 = arith.constant 0 : i32
    %c0_i32_1 = arith.constant 0 : i32
    return %c0_i32, %c0_i32_0 : i32, i32
  }
  func.func @transform_4(%arg0: i32) -> (i32, i32) {
    %c0_i32 = arith.constant 0 : i32
    %c0_i32_0 = arith.constant 0 : i32
    %c0_i32_1 = arith.constant 0 : i32
    return %c0_i32, %c0_i32_0 : i32, i32
  }
  func.func @transform_5(%arg0: i32) -> (i32, i32, i32) {
    %c0_i32 = arith.constant 0 : i32
    %c0_i32_0 = arith.constant 0 : i32
    %c0_i32_1 = arith.constant 0 : i32
    return %arg0, %c0_i32, %c0_i32_0 : i32, i32, i32
  }
  func.func @transform_6(%arg0: i32) -> (i32, i32, i32) {
    %c0_i32 = arith.constant 0 : i32
    %c0_i32_0 = arith.constant 0 : i32
    %c0_i32_1 = arith.constant 0 : i32
    return %arg0, %c0_i32, %c0_i32_0 : i32, i32, i32
  }
  func.func @transform_7(%arg0: i32) -> (i32, i32, i32) {
    %c0_i32 = arith.constant 0 : i32
    %c0_i32_0 = arith.constant 0 : i32
    %c0_i32_1 = arith.constant 0 : i32
    return %arg0, %c0_i32, %c0_i32_0 : i32, i32, i32
  }
  func.func @transform_8(%arg0: i32) -> (i32, i32, i32) {
    %c0_i32 = arith.constant 0 : i32
    %c0_i32_0 = arith.constant 0 : i32
    %c0_i32_1 = arith.constant 0 : i32
    return %arg0, %c0_i32, %c0_i32_0 : i32, i32, i32
  }
  func.func @transform_9(%arg0: i32) -> (i32, i32, i32) {
    %c0_i32 = arith.constant 0 : i32
    %c0_i32_0 = arith.constant 0 : i32
    %c0_i32_1 = arith.constant 0 : i32
    return %arg0, %c0_i32, %c0_i32_0 : i32, i32, i32
  }
  func.func @transform_10(%arg0: i32) -> (i32, i32, i32) {
    %c0_i32 = arith.constant 0 : i32
    %c0_i32_0 = arith.constant 0 : i32
    %c0_i32_1 = arith.constant 0 : i32
    return %arg0, %c0_i32, %c0_i32_0 : i32, i32, i32
  }
  func.func @transform_11(%arg0: i32) -> (i32, i32) {
    %c0_i32 = arith.constant 0 : i32
    %c0_i32_0 = arith.constant 0 : i32
    %c0_i32_1 = arith.constant 0 : i32
    return %c0_i32, %c0_i32_0 : i32, i32
  }
}

module attributes {stable_mosaic.version = 11 : i64} {
  func.func @_embzg_fused_kernel(%arg0: i32, %arg1: memref<16x128xf32, #tpu.memory_space<vmem>>, %arg2: memref<16x4xf32, #tpu.memory_space<vmem>>, %arg3: memref<4x128xf32, #tpu.memory_space<vmem>>, %arg4: memref<16x16xbf16, #tpu.memory_space<vmem>>, %arg5: memref<128x128xf32, #tpu.memory_space<vmem>>, %arg6: memref<1x128x512xbf16, #tpu.memory_space<vmem>>, %arg7: memref<1x1x256xf32, #tpu.memory_space<vmem>>, %arg8: memref<1x128x256xbf16, #tpu.memory_space<vmem>>, %arg9: memref<1x1x256xf32, #tpu.memory_space<vmem>>, %arg10: memref<1x1x128xf32, #tpu.memory_space<vmem>>, %arg11: memref<1x1x128xf32, #tpu.memory_space<vmem>>, %arg12: memref<16x128xf32, #tpu.memory_space<vmem>>, %arg13: memref<16x128xf32, #tpu.memory_space<vmem>>) attributes {dimension_semantics = [#tpu.dimension_semantics<arbitrary>], iteration_bounds = array<i64: 2>, scalar_prefetch = 0 : i64, scratch_operands = 1 : i64, tpu.core_type = #tpu.core_type<tc>, window_params = [{pipeline_mode = #tpu.pipeline_mode<synchronous>, transform_indices = @transform_0, window_bounds = array<i64: 16, 128>}, {pipeline_mode = #tpu.pipeline_mode<synchronous>, transform_indices = @transform_1, window_bounds = array<i64: 16, 4>}, {pipeline_mode = #tpu.pipeline_mode<synchronous>, transform_indices = @transform_2, window_bounds = array<i64: 4, 128>}, {pipeline_mode = #tpu.pipeline_mode<synchronous>, transform_indices = @transform_3, window_bounds = array<i64: 16, 16>}, {pipeline_mode = #tpu.pipeline_mode<synchronous>, transform_indices = @transform_4, window_bounds = array<i64: 128, 128>}, {transform_indices = @transform_5, window_bounds = array<i64: 1, 128, 512>}, {transform_indices = @transform_6, window_bounds = array<i64: 1, 1, 256>}, {transform_indices = @transform_7, window_bounds = array<i64: 1, 128, 256>}, {transform_indices = @transform_8, window_bounds = array<i64: 1, 1, 256>}, {transform_indices = @transform_9, window_bounds = array<i64: 1, 1, 128>}, {transform_indices = @transform_10, window_bounds = array<i64: 1, 1, 128>}, {pipeline_mode = #tpu.pipeline_mode<synchronous>, transform_indices = @transform_11, window_bounds = array<i64: 16, 128>}]} {
    %c0_i32 = arith.constant 0 : i32
    %0 = arith.cmpi eq, %arg0, %c0_i32 : i32
    %1 = arith.extui %0 : i1 to i32
    %c0_i32_0 = arith.constant 0 : i32
    %2 = arith.cmpi ne, %1, %c0_i32_0 : i32
    scf.if %2 {
      %c0_36 = arith.constant 0 : index
      %c0_37 = arith.constant 0 : index
      %61 = vector.load %arg1[%c0_36, %c0_37] : memref<16x128xf32, #tpu.memory_space<vmem>>, vector<16x128xf32>
      %c0_38 = arith.constant 0 : index
      %c0_39 = arith.constant 0 : index
      %62 = vector.load %arg12[%c0_38, %c0_39] : memref<16x128xf32, #tpu.memory_space<vmem>>, vector<16x128xf32>
      tpu.vector_store %arg12[%c0_38, %c0_39], %61 {strides = array<i32>} : memref<16x128xf32, #tpu.memory_space<vmem>>, vector<16x128xf32>,
      %c0_40 = arith.constant 0 : index
      %c0_41 = arith.constant 0 : index
      %63 = vector.load %arg2[%c0_40, %c0_41] : memref<16x4xf32, #tpu.memory_space<vmem>>, vector<16x4xf32>
      %c0_42 = arith.constant 0 : index
      %c0_43 = arith.constant 0 : index
      %64 = vector.load %arg3[%c0_42, %c0_43] : memref<4x128xf32, #tpu.memory_space<vmem>>, vector<4x128xf32>
      %cst_44 = arith.constant dense<0.000000e+00> : vector<16x128xf32>
      %65 = tpu.matmul %63, %64, %cst_44 {dimension_numbers = #tpu.dot_dimension_numbers<[1], [0], [0], [1], [0, 0, 1, 1], [], []>} : vector<16x4xf32>, vector<4x128xf32>, vector<16x128xf32> -> vector<16x128xf32>
      %c0_45 = arith.constant 0 : index
      %c0_46 = arith.constant 0 : index
      %66 = vector.load %arg13[%c0_45, %c0_46] : memref<16x128xf32, #tpu.memory_space<vmem>>, vector<16x128xf32>
      tpu.vector_store %arg13[%c0_45, %c0_46], %65 {strides = array<i32>} : memref<16x128xf32, #tpu.memory_space<vmem>>, vector<16x128xf32>,
    } else {
    }
    %c0 = arith.constant 0 : index
    %c0_1 = arith.constant 0 : index
    %3 = vector.load %arg12[%c0, %c0_1] : memref<16x128xf32, #tpu.memory_space<vmem>>, vector<16x128xf32>
    %c0_2 = arith.constant 0 : index
    %c0_3 = arith.constant 0 : index
    %4 = vector.load %arg13[%c0_2, %c0_3] : memref<16x128xf32, #tpu.memory_space<vmem>>, vector<16x128xf32>
    %5 = arith.truncf %3 : vector<16x128xf32> to vector<16x128xbf16>
    %c0_4 = arith.constant 0 : index
    %c0_5 = arith.constant 0 : index
    %c0_6 = arith.constant 0 : index
    %6 = vector.load %arg6[%c0_4, %c0_5, %c0_6] : memref<1x128x512xbf16, #tpu.memory_space<vmem>>, vector<1x128x512xbf16>
    %7 = vector.shape_cast %6 : vector<1x128x512xbf16> to vector<128x512xbf16>
    %cst = arith.constant dense<0.000000e+00> : vector<16x512xf32>
    %8 = tpu.matmul %5, %7, %cst {dimension_numbers = #tpu.dot_dimension_numbers<[1], [0], [0], [1], [0, 0, 1, 1], [], []>} : vector<16x128xbf16>, vector<128x512xbf16>, vector<16x512xf32> -> vector<16x512xf32>
    %9 = vector.extract_strided_slice %8 {offsets = [0, 0], sizes = [16, 256], strides = [1, 1]} : vector<16x512xf32> to vector<16x256xf32>
    %c0_7 = arith.constant 0 : index
    %c0_8 = arith.constant 0 : index
    %c0_9 = arith.constant 0 : index
    %10 = vector.load %arg7[%c0_7, %c0_8, %c0_9] : memref<1x1x256xf32, #tpu.memory_space<vmem>>, vector<1x1x256xf32>
    %11 = vector.shape_cast %10 : vector<1x1x256xf32> to vector<1x256xf32>
    %12 = vector.broadcast %11 : vector<1x256xf32> to vector<16x256xf32>
    %13 = arith.addf %9, %12 : vector<16x256xf32>
    %cst_10 = arith.constant 0.000000e+00 : f32
    %14 = vector.broadcast %cst_10 : f32 to vector<16x256xf32>
    %15 = arith.maximumf %13, %14 : vector<16x256xf32>
    %16 = vector.extract_strided_slice %15 {offsets = [0, 0], sizes = [16, 128], strides = [1, 1]} : vector<16x256xf32> to vector<16x128xf32>
    %17 = vector.extract_strided_slice %15 {offsets = [0, 128], sizes = [16, 128], strides = [1, 1]} : vector<16x256xf32> to vector<16x128xf32>
    %18 = arith.subf %17, %16 : vector<16x128xf32>
    %19 = arith.mulf %4, %18 : vector<16x128xf32>
    %20 = arith.addf %16, %19 : vector<16x128xf32>
    %c0_11 = arith.constant 0 : index
    %c0_12 = arith.constant 0 : index
    %21 = vector.load %arg4[%c0_11, %c0_12] : memref<16x16xbf16, #tpu.memory_space<vmem>>, vector<16x16xbf16>
    %22 = arith.truncf %20 : vector<16x128xf32> to vector<16x128xbf16>
    %cst_13 = arith.constant dense<0.000000e+00> : vector<16x128xf32>
    %23 = tpu.matmul %21, %22, %cst_13 {dimension_numbers = #tpu.dot_dimension_numbers<[1], [0], [0], [1], [0, 0, 1, 1], [], []>} : vector<16x16xbf16>, vector<16x128xbf16>, vector<16x128xf32> -> vector<16x128xf32>
    %c0_14 = arith.constant 0 : index
    %c0_15 = arith.constant 0 : index
    %24 = vector.load %arg5[%c0_14, %c0_15] : memref<128x128xf32, #tpu.memory_space<vmem>>, vector<128x128xf32>
    %cst_16 = arith.constant dense<0.000000e+00> : vector<16x128xf32>
    %25 = tpu.matmul %23, %24, %cst_16 {dimension_numbers = #tpu.dot_dimension_numbers<[1], [0], [0], [1], [0, 0, 1, 1], [], []>} : vector<16x128xf32>, vector<128x128xf32>, vector<16x128xf32> -> vector<16x128xf32>
    %26 = arith.mulf %23, %23 : vector<16x128xf32>
    %c0_17 = arith.constant 0 : index
    %c0_18 = arith.constant 0 : index
    %27 = vector.load %arg5[%c0_17, %c0_18] : memref<128x128xf32, #tpu.memory_space<vmem>>, vector<128x128xf32>
    %cst_19 = arith.constant dense<0.000000e+00> : vector<16x128xf32>
    %28 = tpu.matmul %26, %27, %cst_19 {dimension_numbers = #tpu.dot_dimension_numbers<[1], [0], [0], [1], [0, 0, 1, 1], [], []>} : vector<16x128xf32>, vector<128x128xf32>, vector<16x128xf32> -> vector<16x128xf32>
    %29 = arith.mulf %25, %25 : vector<16x128xf32>
    %30 = arith.subf %28, %29 : vector<16x128xf32>
    %31 = arith.subf %23, %25 : vector<16x128xf32>
    %cst_20 = arith.constant 9.99999974E-6 : f32
    %32 = vector.broadcast %cst_20 : f32 to vector<16x128xf32>
    %33 = arith.addf %30, %32 : vector<16x128xf32>
    %34 = math.rsqrt %33 : vector<16x128xf32>
    %35 = arith.mulf %31, %34 : vector<16x128xf32>
    %c0_21 = arith.constant 0 : index
    %c0_22 = arith.constant 0 : index
    %c0_23 = arith.constant 0 : index
    %36 = vector.load %arg10[%c0_21, %c0_22, %c0_23] : memref<1x1x128xf32, #tpu.memory_space<vmem>>, vector<1x1x128xf32>
    %37 = vector.shape_cast %36 : vector<1x1x128xf32> to vector<1x128xf32>
    %38 = vector.broadcast %37 : vector<1x128xf32> to vector<16x128xf32>
    %39 = arith.mulf %35, %38 : vector<16x128xf32>
    %c0_24 = arith.constant 0 : index
    %c0_25 = arith.constant 0 : index
    %c0_26 = arith.constant 0 : index
    %40 = vector.load %arg11[%c0_24, %c0_25, %c0_26] : memref<1x1x128xf32, #tpu.memory_space<vmem>>, vector<1x1x128xf32>
    %41 = vector.shape_cast %40 : vector<1x1x128xf32> to vector<1x128xf32>
    %42 = vector.broadcast %41 : vector<1x128xf32> to vector<16x128xf32>
    %43 = arith.addf %39, %42 : vector<16x128xf32>
    %44 = arith.truncf %43 : vector<16x128xf32> to vector<16x128xbf16>
    %c0_27 = arith.constant 0 : index
    %c0_28 = arith.constant 0 : index
    %c0_29 = arith.constant 0 : index
    %45 = vector.load %arg8[%c0_27, %c0_28, %c0_29] : memref<1x128x256xbf16, #tpu.memory_space<vmem>>, vector<1x128x256xbf16>
    %46 = vector.shape_cast %45 : vector<1x128x256xbf16> to vector<128x256xbf16>
    %cst_30 = arith.constant dense<0.000000e+00> : vector<16x256xf32>
    %47 = tpu.matmul %44, %46, %cst_30 {dimension_numbers = #tpu.dot_dimension_numbers<[1], [0], [0], [1], [0, 0, 1, 1], [], []>} : vector<16x128xbf16>, vector<128x256xbf16>, vector<16x256xf32> -> vector<16x256xf32>
    %48 = vector.extract_strided_slice %8 {offsets = [0, 256], sizes = [16, 256], strides = [1, 1]} : vector<16x512xf32> to vector<16x256xf32>
    %49 = arith.addf %47, %48 : vector<16x256xf32>
    %c0_31 = arith.constant 0 : index
    %c0_32 = arith.constant 0 : index
    %c0_33 = arith.constant 0 : index
    %50 = vector.load %arg9[%c0_31, %c0_32, %c0_33] : memref<1x1x256xf32, #tpu.memory_space<vmem>>, vector<1x1x256xf32>
    %51 = vector.shape_cast %50 : vector<1x1x256xf32> to vector<1x256xf32>
    %52 = vector.broadcast %51 : vector<1x256xf32> to vector<16x256xf32>
    %53 = arith.addf %49, %52 : vector<16x256xf32>
    %54 = vector.extract_strided_slice %53 {offsets = [0, 0], sizes = [16, 128], strides = [1, 1]} : vector<16x256xf32> to vector<16x128xf32>
    %55 = vector.extract_strided_slice %53 {offsets = [0, 128], sizes = [16, 128], strides = [1, 1]} : vector<16x256xf32> to vector<16x128xf32>
    %56 = arith.subf %55, %54 : vector<16x128xf32>
    %57 = arith.mulf %4, %56 : vector<16x128xf32>
    %58 = arith.addf %54, %57 : vector<16x128xf32>
    %59 = arith.addf %58, %3 : vector<16x128xf32>
    %c0_34 = arith.constant 0 : index
    %c0_35 = arith.constant 0 : index
    %60 = vector.load %arg12[%c0_34, %c0_35] : memref<16x128xf32, #tpu.memory_space<vmem>>, vector<16x128xf32>
    tpu.vector_store %arg12[%c0_34, %c0_35], %59 {strides = array<i32>} : memref<16x128xf32, #tpu.memory_space<vmem>>, vector<16x128xf32>,
    return
  }
  func.func @transform_0(%arg0: i32) -> (i32, i32) {
    %c0_i32 = arith.constant 0 : i32
    %c0_i32_0 = arith.constant 0 : i32
    %c0_i32_1 = arith.constant 0 : i32
    return %c0_i32, %c0_i32_0 : i32, i32
  }
  func.func @transform_1(%arg0: i32) -> (i32, i32) {
    %c0_i32 = arith.constant 0 : i32
    %c0_i32_0 = arith.constant 0 : i32
    %c0_i32_1 = arith.constant 0 : i32
    return %c0_i32, %c0_i32_0 : i32, i32
  }
  func.func @transform_2(%arg0: i32) -> (i32, i32) {
    %c0_i32 = arith.constant 0 : i32
    %c0_i32_0 = arith.constant 0 : i32
    %c0_i32_1 = arith.constant 0 : i32
    return %c0_i32, %c0_i32_0 : i32, i32
  }
  func.func @transform_3(%arg0: i32) -> (i32, i32) {
    %c0_i32 = arith.constant 0 : i32
    %c0_i32_0 = arith.constant 0 : i32
    %c0_i32_1 = arith.constant 0 : i32
    return %c0_i32, %c0_i32_0 : i32, i32
  }
  func.func @transform_4(%arg0: i32) -> (i32, i32) {
    %c0_i32 = arith.constant 0 : i32
    %c0_i32_0 = arith.constant 0 : i32
    %c0_i32_1 = arith.constant 0 : i32
    return %c0_i32, %c0_i32_0 : i32, i32
  }
  func.func @transform_5(%arg0: i32) -> (i32, i32, i32) {
    %c0_i32 = arith.constant 0 : i32
    %c0_i32_0 = arith.constant 0 : i32
    %c0_i32_1 = arith.constant 0 : i32
    return %arg0, %c0_i32, %c0_i32_0 : i32, i32, i32
  }
  func.func @transform_6(%arg0: i32) -> (i32, i32, i32) {
    %c0_i32 = arith.constant 0 : i32
    %c0_i32_0 = arith.constant 0 : i32
    %c0_i32_1 = arith.constant 0 : i32
    return %arg0, %c0_i32, %c0_i32_0 : i32, i32, i32
  }
  func.func @transform_7(%arg0: i32) -> (i32, i32, i32) {
    %c0_i32 = arith.constant 0 : i32
    %c0_i32_0 = arith.constant 0 : i32
    %c0_i32_1 = arith.constant 0 : i32
    return %arg0, %c0_i32, %c0_i32_0 : i32, i32, i32
  }
  func.func @transform_8(%arg0: i32) -> (i32, i32, i32) {
    %c0_i32 = arith.constant 0 : i32
    %c0_i32_0 = arith.constant 0 : i32
    %c0_i32_1 = arith.constant 0 : i32
    return %arg0, %c0_i32, %c0_i32_0 : i32, i32, i32
  }
  func.func @transform_9(%arg0: i32) -> (i32, i32, i32) {
    %c0_i32 = arith.constant 0 : i32
    %c0_i32_0 = arith.constant 0 : i32
    %c0_i32_1 = arith.constant 0 : i32
    return %arg0, %c0_i32, %c0_i32_0 : i32, i32, i32
  }
  func.func @transform_10(%arg0: i32) -> (i32, i32, i32) {
    %c0_i32 = arith.constant 0 : i32
    %c0_i32_0 = arith.constant 0 : i32
    %c0_i32_1 = arith.constant 0 : i32
    return %arg0, %c0_i32, %c0_i32_0 : i32, i32, i32
  }
  func.func @transform_11(%arg0: i32) -> (i32, i32) {
    %c0_i32 = arith.constant 0 : i32
    %c0_i32_0 = arith.constant 0 : i32
    %c0_i32_1 = arith.constant 0 : i32
    return %c0_i32, %c0_i32_0 : i32, i32
  }
}

</mosaic_0001>

<bundles_post_ra>
// kernel: tpu_custom_call.1
= control target key start
LH: loop header
LB: loop body
LE: loop exit
PB: predicated region body
PF: predicated region fallthrough
CT: control target
= control target key end

     0   :  { %s2571_s0 = inlined_call_operand.hbm [shape: f32[16,128], index: 0, kind: input, shape index: {}, may-alias: {0,11}]   ;;  %s2572_s1 = inlined_call_operand.vmem [shape: f32[16,4], index: 1, kind: input, shape index: {}]   ;;  %s2573_s2 = inlined_call_operand.vmem [shape: f32[4,128], index: 2, kind: input, shape index: {}]   ;;  %s2574_s3 = inlined_call_operand.vmem [shape: bf16[16,16], index: 3, kind: input, shape index: {}]   ;;  %s2575_s4 = inlined_call_operand.hbm [shape: f32[128,128], index: 4, kind: input, shape index: {}]   ;;  %s2576_s5 = inlined_call_operand.hbm [shape: bf16[2,128,512], index: 5, kind: input, shape index: {}]   ;;  %s2577_s6 = inlined_call_operand.vmem [shape: f32[2,1,256], index: 6, kind: input, shape index: {}]   ;;  %s2578_s7 = inlined_call_operand.hbm [shape: bf16[2,128,256], index: 7, kind: input, shape index: {}]   ;;  %s2579_s8 = inlined_call_operand.vmem [shape: f32[2,1,256], index: 8, kind: input, shape index: {}]   ;;  %s2580_s9 = inlined_call_operand.vmem [shape: f32[2,1,128], index: 9, kind: input, shape index: {}]   ;;  %s2581_s10 = inlined_call_operand.vmem [shape: f32[2,1,128], index: 10, kind: input, shape index: {}]   ;;  %s2582_s11 = inlined_call_operand.hbm [shape: f32[16,128], index: 11, kind: output, shape index: {}, may-alias: {0,11}]  }
   0x1   :  { %2598 = sst [smem:[#allocation17_spill]] %s2571_s0 }
   0x2   :  { %2599 = sst [smem:[#allocation18_spill]] %s2572_s1 }
   0x3   :  { %2600 = sst [smem:[#allocation19_spill]] %s2573_s2 }
   0x4   :  { %2601 = sst [smem:[#allocation20_spill]] %s2574_s3 }
   0x5   :  { %2602 = sst [smem:[#allocation21_spill]] %s2582_s11 }
   0x6   :  { %16 = vsyncpa [#allocation4], 0 }
   0x7   :  { %17 = vsyncpa [#allocation7], 0 }
   0x8   :  { %18 = vsyncpa [#allocation5], 0  ;;  %s2177_s17 = smov 0   ;;  %s2179_s18 = smov 0  }
   0x9   :  { %s2181_s19 = smov 0   ;;  %s2183_s20 = smov 0  }
   0xa LB: > { %s2196_s21 = sadd.s32 4294967295, %s2101_s20   ;;  %s2199_s22 = sadd.s32 1, %s2101_s20   ;;  %s2101_s20 = sphi %s2183_s20, %s2632_s20   ;;  %s2097_s19 = sphi %s2181_s19, %s2636_s19   ;;  %s2093_s18 = sphi %s2179_s18, %s2635_s18   ;;  %s2089_s17 = sphi %s2177_s17, %s2634_s17  }
   0xb   : > { %2603 = sst [smem:[#allocation15_spill]] %s2199_s22  ;;  %s133_s23 = ssub.s32 %s2101_s20, %s2199_s22 }
   0xc   : > { %s136_s24 = sadd.s32 1, %s2097_s19  ;;  %p134_p0 = scmp.eq.s32.totalorder %s133_s23, 0 }
   0xd   : > { %p143_p1 = scmp.ne.s32.totalorder %s2097_s19, %s2093_s18  ;;  %p144_p2 = scmp.eq.s32.totalorder %s2101_s20, 0 }
   0xe   : > { %p149_p3 = scmp.ne.s32.totalorder %s2093_s18, %s2089_s17  ;;  %p2583_p5 = scmp.eq.s32.totalorder %s2196_s21, 0 }
   0xf   : > { %s2209_s25 = scalar_select %p134_p0, %s2097_s19, %s136_s24  }
  0x10   : > { %p2211_p4 = por %p144_p2, %p143_p1  ;;  %p1486_p6 = scmp.ge.s32.totalorder %s2101_s20, 1 }
  0x11   : > { %2604 = sst [smem:[#allocation16_spill]] %s2209_s25  ;;  %p311_p7 = scmp.lt.s32.totalorder %s2101_s20, 3 }
  0x12   : > { %p2220_p8 = por %p2583_p5, %p149_p3  ;;  %s2103_s29 = smov [#allocation3]  }
  0x13   : > { %p2225_p10 = pnand %p1486_p6, %p311_p7  ;;  %s323_s30 = sshll.u32 %s2103_s29, 4  ;;  %s324_s30 = int_to_ptr.vmem [resolvable:$true] %s323_s30 }
  0x14   : > { %s2606_s27 = scalar_select %p2220_p8, 1, 0 }
  0x15   : > { %s2607_s28 = scalar_select %p2225_p10, 1, 0 }
  0x16   : > { %p1771_p11 = pneg %p2225_p10  ;;  %p1787_p13 = scmp.lt.s32.totalorder %s2101_s20, 2 }
  0x17   : > { %s359_s13 = sand.u32 1, %s2101_s20   ;;  %s2610_s0 = sld [smem:[#allocation17_spill]] }
  0x18   : > { %p2233_p12 = pnand %p1771_p11, %p2583_p5  ;;  %p2242_p0 = pnand %p1787_p13, %p2211_p4 }
  0x1a   : > { %s2609_s15 = scalar_select %p2242_p0, 1, 0 }
  0x1b   : > { %p2591_p2 = pneg %p2233_p12 }
  0x1d   : > { %s1913_s23 = scalar_lea.hbm %s2610_s0, 256 }
  0x1e   : > { %p1914_p1 = scmp.ne.s32.totalorder %s2610_s0, %s1913_s23  ;;  %p1920_p4 = scmp.lt.u32.totalorder %s1913_s23, %s2610_s0 }
  0x20   : > { %p1916_p3 = pnand %p2591_p2, %p1914_p1 }
  0x22   : > { %p1917_p6 = pneg %p1916_p3 }
  0x24   : > { %p1922_p7 = pnand %p1920_p4, %p1917_p6 }
  0x26   : > { %1925 = shalt.err (!%p1922_p7)
}
  0x27   : > { %s1926_s25 = scalar_lea.vmem %s324_s30, 256  ;;  %p1934_p5 = scmp.lt.s32.totalorder %s324_s30, %s324_s30 }
  0x28   : > { %p1927_p11 = scmp.ne.s32.totalorder %s324_s30, %s1926_s25  ;;  %p1935_p8 = scmp.lt.s32.totalorder %s1926_s25, %s1926_s25 }
  0x2a   : > { %p1929_p13 = pnand %p1927_p11, %p2591_p2  ;;  %p1936_p10 = por %p1935_p8, %p1934_p5 }
  0x2c   : > { %p1930_p9 = pneg %p1929_p13 }
  0x2e   : > { %p1937_p0 = pnand %p1936_p10, %p1930_p9 }
  0x30   : > { %1940 = shalt.err (!%p1937_p0)
}
  0x31   : > { %s2592_s16 = smov 128   ;;  %s2594_s14 = smov 8  }
  0x32   : > { %1774 = dma.hbm_to_vmem [thread:$0]  (!%p2233_p12), %s2610_s0, 256, %s324_s30, [#allocation4], %s2592_s16, %s2592_s16, %s2594_s14  }
  0x33   : > { %s2611_s24 = sand.u32 1, %s2097_s19   ;;  %s1563_s29 = sshll.u32 %s2101_s20, 12 }
  0x34   : > { %s1490_s25 = sshll.u32 %s2611_s24, 8  ;;  %s2277_s11 = scalar_lea.hbm %s2576_s5, %s1563_s29 }
  0x35   : > { %s363_s3 = scalar_lea.vmem [#allocation8], %s1490_s25  ;;  %s2281_s2 = scalar_lea.sflag [#allocation4], %s359_s13 }
  0x36   : > { %s370_s1 = sshll.u32 %s363_s3, 4  ;;  %s1941_s17 = scalar_lea.hbm %s2277_s11, 4096  ;;  %s2279_s1 = int_to_ptr.vmem [resolvable:$true] %s370_s1 }
  0x37   : > { %p1942_p5 = scmp.ne.s32.totalorder %s2277_s11, %s1941_s17  ;;  %p2612_p8 = scmp.ne.s32.totalorder %s2609_s15, 0 }
  0x38   : > { %s1946_s23 = scalar_lea.hbm %s2576_s5, 8192  ;;  %p1947_p1 = scmp.lt.u32.totalorder %s2277_s11, %s2576_s5 }
  0x39   : > { %p2596_p9 = pneg %p2612_p8  ;;  %p1948_p3 = scmp.lt.u32.totalorder %s1946_s23, %s1941_s17 }
  0x3a   : > { %p1950_p4 = scmp.lt.u32.totalorder %s1941_s17, %s2277_s11 }
  0x3b   : > { %p1944_p10 = pnand %p2596_p9, %p1942_p5  ;;  %p1949_p6 = por %p1948_p3, %p1947_p1 }
  0x3d   : > { %p1945_p0 = pneg %p1944_p10  ;;  %p1951_p7 = por %p1950_p4, %p1949_p6 }
  0x3f   : > { %p1952_p11 = pnand %p1951_p7, %p1945_p0 }
  0x41   : > { %1955 = shalt.err (!%p1952_p11)
}
  0x42   : > { %s1956_s3 = scalar_lea.vmem %s2279_s1, 4096  ;;  %s2106_s13 = smov [#allocation8]  }
  0x43   : > { %p1957_p13 = scmp.ne.s32.totalorder %s2279_s1, %s1956_s3  ;;  %s1961_s25 = sshll.u32 %s2106_s13, 4  ;;  %s1962_s25 = int_to_ptr.vmem [resolvable:$false] %s1961_s25 }
  0x44   : > { %s1963_s26 = scalar_lea.vmem %s1962_s25, 8192  ;;  %p1964_p2 = scmp.lt.s32.totalorder %s2279_s1, %s1962_s25 }
  0x45   : > { %p1959_p5 = pnand %p1957_p13, %p2596_p9  ;;  %p1965_p1 = scmp.lt.s32.totalorder %s1963_s26, %s1956_s3 }
  0x47   : > { %p1960_p10 = pneg %p1959_p5  ;;  %p1966_p3 = por %p1965_p1, %p1964_p2 }
  0x49   : > { %p1967_p6 = pnand %p1966_p3, %p1960_p10 }
  0x4b   : > { %1970 = shalt.err (!%p1967_p6)
}
  0x4c   : > { %s2107_s17 = smov 256   ;;  %s2108_s22 = smov 16  }
  0x4d   : > { %1781 = dma.hbm_to_vmem [thread:$0]  (!%p2612_p8), %s2277_s11, 4096, %s2279_s1, %s2281_s2, %s2107_s17, %s2107_s17, %s2108_s22  }
  0x4e   : > { %s2613_s30 = sand.u32 1, %s2097_s19   ;;  %s2109_s24 = smov [#allocation6]  }
  0x4f   : > { %s1493_s23 = sshll.u32 %s2613_s30, 7  ;;  %s345_s29 = sshll.u32 %s2109_s24, 4  ;;  %s346_s29 = int_to_ptr.vmem [resolvable:$true] %s345_s29 }
  0x50   : > { %s1564_s3 = sshll.u32 %s2101_s20, 11  ;;  %s1971_s26 = scalar_lea.hbm %s2575_s4, 2048 }
  0x51   : > { %p1972_p2 = scmp.ne.s32.totalorder %s2575_s4, %s1971_s26  ;;  %p2614_p0 = pneg %p2233_p12 }
  0x52   : > { %p1978_p11 = scmp.lt.u32.totalorder %s1971_s26, %s2575_s4 }
  0x53   : > { %p1974_p4 = pnand %p1972_p2, %p2614_p0 }
  0x55   : > { %p1975_p7 = pneg %p1974_p4 }
  0x57   : > { %p1980_p13 = pnand %p1978_p11, %p1975_p7 }
  0x59   : > { %1983 = shalt.err (!%p1980_p13)
}
  0x5a   : > { %s1984_s11 = scalar_lea.vmem %s346_s29, 2048  ;;  %p2615_p10 = pmov %p2614_p0 }
  0x5b   : > { %p1985_p5 = scmp.ne.s32.totalorder %s346_s29, %s1984_s11  ;;  %p1992_p6 = scmp.lt.s32.totalorder %s346_s29, %s346_s29 }
  0x5c   : > { %p1993_p9 = scmp.lt.s32.totalorder %s1984_s11, %s1984_s11 }
  0x5d   : > { %p1987_p1 = pnand %p1985_p5, %p2615_p10 }
  0x5e   : > { %p1994_p8 = por %p1993_p9, %p1992_p6 }
  0x5f   : > { %p1988_p3 = pneg %p1987_p1 }
  0x61   : > { %p1995_p0 = pnand %p1994_p8, %p1988_p3 }
  0x63   : > { %1998 = shalt.err (!%p1995_p0)
}
  0x64   : > { %s2616_s20 = smov 8   ;;  %s2617_s16 = smov 128  }
  0x65   : > { %1777 = dma.hbm_to_vmem [thread:$0]  (!%p2233_p12), %s2575_s4, 2048, %s346_s29, [#allocation7], %s2617_s16, %s2617_s16, %s2616_s20  }
  0x66   : > { %s2338_s30 = scalar_lea.hbm %s2578_s7, %s1564_s3  ;;  %s391_s24 = scalar_lea.vmem [#allocation9], %s1493_s23 }
  0x67   : > { %s398_s13 = sshll.u32 %s391_s24, 4  ;;  %s1999_s12 = scalar_lea.hbm %s2338_s30, 2048  ;;  %s2340_s13 = int_to_ptr.vmem [resolvable:$true] %s398_s13 }
  0x68   : > { %p2000_p8 = scmp.ne.s32.totalorder %s2338_s30, %s1999_s12  ;;  %p2618_p9 = scmp.ne.s32.totalorder %s2609_s15, 0 }
  0x69   : > { %s2004_s26 = scalar_lea.hbm %s2578_s7, 4096  ;;  %p2005_p12 = scmp.lt.u32.totalorder %s2338_s30, %s2578_s7 }
  0x6a   : > { %p2619_p2 = pneg %p2618_p9  ;;  %p2006_p11 = scmp.lt.u32.totalorder %s2004_s26, %s1999_s12 }
  0x6b   : > { %p2008_p5 = scmp.lt.u32.totalorder %s1999_s12, %s2338_s30 }
  0x6c   : > { %p2002_p4 = pnand %p2000_p8, %p2619_p2  ;;  %p2007_p13 = por %p2006_p11, %p2005_p12 }
  0x6e   : > { %p2003_p7 = pneg %p2002_p4  ;;  %p2009_p10 = por %p2008_p5, %p2007_p13 }
  0x70   : > { %p2010_p1 = pnand %p2009_p10, %p2003_p7 }
  0x72   : > { %2013 = shalt.err (!%p2010_p1)
}
  0x73   : > { %s2014_s23 = scalar_lea.vmem %s2340_s13, 2048  ;;  %p2620_p6 = pmov %p2619_p2 }
  0x74   : > { %p2015_p3 = scmp.ne.s32.totalorder %s2340_s13, %s2014_s23  ;;  %s2110_s11 = smov [#allocation9]  }
  0x75   : > { %s2019_s0 = sshll.u32 %s2110_s11, 4  ;;  %s2020_s0 = int_to_ptr.vmem [resolvable:$false] %s2019_s0 }
  0x76   : > { %p2017_p0 = pnand %p2015_p3, %p2620_p6  ;;  %s2021_s14 = scalar_lea.vmem %s2020_s0, 4096 }
  0x77   : > { %p2022_p2 = scmp.lt.s32.totalorder %s2340_s13, %s2020_s0  ;;  %p2023_p4 = scmp.lt.s32.totalorder %s2021_s14, %s2014_s23 }
  0x78   : > { %p2018_p8 = pneg %p2017_p0 }
  0x79   : > { %p2024_p12 = por %p2023_p4, %p2022_p2 }
  0x7b   : > { %p2025_p11 = pnand %p2024_p12, %p2018_p8 }
  0x7d   : > { %2028 = shalt.err (!%p2025_p11)
}
  0x7e   : > { %1784 = dma.hbm_to_vmem [thread:$0]  (!%p2618_p9), %s2338_s30, 2048, %s2340_s13, %s2281_s2, %s2617_s16, %s2617_s16, %s2616_s20  }
  0x7f   : > { %p2621_p7 = scmp.ne.s32.totalorder %s2607_s28, 0 }
  0x80   : > { %p2622_p13 = scmp.eq.s32.totalorder (!%p2621_p7), %s2196_s21, 0 }
  0x81   : > { %429 = sbr.rel (%p2621_p7) target bundleno = 1337 (0x539), region = 64 }
  0x88   : > { %2072 = dma.done.wait (%p2622_p13), [#allocation4], 256   ;;  %p2623_p5 = pmov %p2622_p13 }
  0x8a   : > { %2074 = vsyncadd (%p2623_p5), [#allocation4], 4294967040  ;;  %p2624_p10 = pmov %p2623_p5 }
  0x8b   : > { %p2625_p1 = pmov %p2623_p5 }
  0x8c   : > { %2076 = dma.done.wait (%p2624_p10), [#allocation7], 2048  }
  0x8d   : > { %2078 = vsyncadd (%p2625_p1), [#allocation7], 4294965248  ;;  %s439_s15 = sand.u32 1, %s2196_s21   ;;  %s441_s2 = sand.u32 1, %s2093_s18  }
  0x8e   : > { %s1499_s20 = sshll.u32 %s441_s2, 8  ;;  %s440_s28 = scalar_lea.sflag [#allocation4], %s439_s15 }
  0x8f   : > { %s2381_s16 = scalar_lea.vmem [#allocation8], %s1499_s20  ;;  %p2626_p9 = scmp.ne.s32.totalorder %s2606_s27, 0 }
  0x91   : > { %2080 = dma.done.wait (%p2626_p9), %s440_s28, 6144  }
  0x92   : > { %2082 = vsyncadd (%p2626_p9), %s440_s28, 4294961152  ;;  %s1500_s17 = sshll.u32 %s441_s2, 7  ;;  %p505_p3 = scmp.lt.s32.totalorder %s2196_s21, 1 }
  0x93   : > { %s2410_s14 = scalar_lea.vmem [#allocation9], %s1500_s17  ;;  %p2627_p6 = scmp.ne.s32.totalorder %s2196_s21, 0 }
  0x94   : > { %s2389_s22 = scalar_select %p505_p3, %s2196_s21, 1 }
  0x95   : > { %523 = sbr.rel (%p2627_p6) target bundleno = 374 (0x176), region = 84  ;;  %v524_v0 = vld [vmem:[#allocation3] sm:$0xff] (!%p2627_p6)  ;;  %v525_v1 = vld [vmem:[#allocation3 + $0x8] sm:$0xff] (!%p2627_p6)  ;;  %s2628_s20 = sld [smem:[#allocation19_spill]] (!%p2627_p6)  ;;  %vm538_vm0 = vcmask (!%p2627_p6), 1043456   ;;  %vm531_vm1 = vcmask (!%p2627_p6), 31744  }
  0x96   : > { %s1501_s30 = sshll.u32 %s2389_s22, 1  ;;  %s515_s12 = scalar_lea.vmem %s2580_s9, %s2389_s22  ;;  %526 = vst [vmem:[#allocation10] sm:$0xff] (!%p2627_p6), %v524_v0  ;;  %527 = vst [vmem:[#allocation10 + $0x8] sm:$0xff] (!%p2627_p6), %v525_v1 }
  0x97   : > { %s2399_s26 = scalar_lea.vmem %s2577_s6, %s1501_s30  ;;  %s2404_s1 = scalar_lea.vmem %s2579_s8, %s1501_s30 }
  0x98   : > { %s518_s0 = scalar_lea.vmem %s2581_s10, %s2389_s22  ;;  %s2629_s24 = sld [smem:[#allocation18_spill]] (!%p2627_p6) }
  0x9b   : > { %v530_v2 = vld [vmem:[%s2628_s20] sm:$0xf] (!%p2627_p6) }
  0x9c   : > { %1606 = vmatprep.subr.msk.mxu0 %vm538_vm0, %v530_v2 }
  0x9d   : > { %1607 = vmatpush3.msk.msra.mxu0 %vm538_vm0, %v530_v2 }
  0x9e   : > { %v528_v3 = vld [vmem:[%s2629_s24] sm:$0xff]  ;;  %v529_v4 = vld [vmem:[%s2629_s24 + $0x8] sm:$0xff] }
  0x9f   : > { %1608 = vmatprep.mubr.msk.f32.mxu0 %vm531_vm1, %v528_v3 }
  0xa0   : > { %1609 = vmatmul.mubr.msk.f32.vlgmr.msra.gmra.mrb[0].mxu0 %vm531_vm1, %v529_v4 }
 0x173   : > { %v1610_v5 = vpop.f32.mrb[0].mxu0 }
 0x174   : > { %618 = vst [vmem:[#allocation2 + $0x8] sm:$0xff] %v1610_v5  ;;  %v608_v6 = vpop.f32.mrb[1].mxu0 }
 0x175   : > { %617 = vst [vmem:[#allocation2] sm:$0xff] %v608_v6 }
 0x176 PF: > { %v1836_v7 = vld [vmem:[%s2381_s16 + $0x4] ss:$16 sps:$4 sm:$0xff]   ;;  %v1838_v8 = vld [vmem:[%s2381_s16] ss:$16 sps:$4 sm:$0xff]   ;;  %v2111_v9 = vmov 0   ;;  %v2112_v27 = vmov 0.0   ;;  %v904_v4 = vlaneseq }
 0x177   : > { %848 = vmatprep.mubr.bf16.mxu0 %v2111_v9  ;;  %891 = vmatprep.mubr.bf16.mxu1 %v2111_v9  ;;  %v1839_v10 = vld [vmem:[%s2381_s16 + $0x24] ss:$16 sps:$4 sm:$0xff]   ;;  %v1841_v11 = vld [vmem:[%s2381_s16 + $0x20] ss:$16 sps:$4 sm:$0xff]   ;;  %v2443_v25 = vld [vmem:[#allocation10 + $0x8] sm:$0xff]  ;;  %vm2113_vm2 = vmmov 0  }
 0x178   : > { %816 = vmatprep.subr.bf16.mxu0 %v1836_v7  ;;  %v1842_v12 = vld [vmem:[%s2381_s16 + $0x44] ss:$16 sps:$4 sm:$0xff]   ;;  %v1844_v13 = vld [vmem:[%s2381_s16 + $0x40] ss:$16 sps:$4 sm:$0xff]   ;;  %v1861_v28 = vld [vmem:[%s2381_s16 + $0xc] ss:$16 sps:$4 sm:$0xff]  }
 0x179   : > { %817 = vmatpush1.bf16.msra.mxu0 %v1838_v8  ;;  %v1845_v14 = vld [vmem:[%s2381_s16 + $0x64] ss:$16 sps:$4 sm:$0xff]   ;;  %v1847_v15 = vld [vmem:[%s2381_s16 + $0x60] ss:$16 sps:$4 sm:$0xff]   ;;  %v1863_v29 = vld [vmem:[%s2381_s16 + $0x8] ss:$16 sps:$4 sm:$0xff]   ;;  %859 = vmatprep.subr.bf16.mxu1 %v1861_v28 }
 0x17a   : > { %818 = vmatprep.subr.bf16.mxu0 %v1839_v10  ;;  %v1848_v16 = vld [vmem:[%s2381_s16 + $0x84] ss:$16 sps:$4 sm:$0xff]   ;;  %v1850_v17 = vld [vmem:[%s2381_s16 + $0x80] ss:$16 sps:$4 sm:$0xff]   ;;  %v1864_v30 = vld [vmem:[%s2381_s16 + $0x2c] ss:$16 sps:$4 sm:$0xff]   ;;  %860 = vmatpush1.bf16.msra.mxu1 %v1863_v29 }
 0x17b   : > { %v1851_v18 = vld [vmem:[%s2381_s16 + $0xa4] ss:$16 sps:$4 sm:$0xff]   ;;  %v1853_v19 = vld [vmem:[%s2381_s16 + $0xa0] ss:$16 sps:$4 sm:$0xff]   ;;  %v1866_v31 = vld [vmem:[%s2381_s16 + $0x28] ss:$16 sps:$4 sm:$0xff]   ;;  %861 = vmatprep.subr.bf16.mxu1 %v1864_v30 }
 0x17c   : > { %v1854_v20 = vld [vmem:[%s2381_s16 + $0xc4] ss:$16 sps:$4 sm:$0xff]   ;;  %v1856_v21 = vld [vmem:[%s2381_s16 + $0xc0] ss:$16 sps:$4 sm:$0xff]   ;;  %v1867_v32 = vld [vmem:[%s2381_s16 + $0x4c] ss:$16 sps:$4 sm:$0xff]  }
 0x17d   : > { %819 = vmatpush1.bf16.msra.mxu0 %v1841_v11  ;;  %v1857_v22 = vld [vmem:[%s2381_s16 + $0xe4] ss:$16 sps:$4 sm:$0xff]   ;;  %v1859_v23 = vld [vmem:[%s2381_s16 + $0xe0] ss:$16 sps:$4 sm:$0xff]   ;;  %v1869_v33 = vld [vmem:[%s2381_s16 + $0x48] ss:$16 sps:$4 sm:$0xff]  }
 0x17e   : > { %820 = vmatprep.subr.bf16.mxu0 %v1842_v12  ;;  %v2441_v24 = vld [vmem:[#allocation10] sm:$0xff]  ;;  %862 = vmatpush1.bf16.msra.mxu1 %v1866_v31  ;;  %v1870_v34 = vld [vmem:[%s2381_s16 + $0x6c] ss:$16 sps:$4 sm:$0xff]   ;;  %v1872_v35 = vld [vmem:[%s2381_s16 + $0x68] ss:$16 sps:$4 sm:$0xff]   ;;  %v2475_v5 = vshrl.u32 %v904_v4, 7 }
 0x17f   : > { %v623_v26 = vpack.c.bf16 %v2443_v25, %v2441_v24  ;;  %863 = vmatprep.subr.bf16.mxu1 %v1867_v32  ;;  %v1873_v36 = vld [vmem:[%s2381_s16 + $0x8c] ss:$16 sps:$4 sm:$0xff]   ;;  %v1875_v37 = vld [vmem:[%s2381_s16 + $0x88] ss:$16 sps:$4 sm:$0xff]   ;;  %v981_v43 = vld [vmem:[#allocation6] sm:$0xff]  ;;  %s2630_s25 = sld [smem:[#allocation20_spill]] }
 0x180   : > { %v1876_v38 = vld [vmem:[%s2381_s16 + $0xac] ss:$16 sps:$4 sm:$0xff]   ;;  %v1878_v39 = vld [vmem:[%s2381_s16 + $0xa8] ss:$16 sps:$4 sm:$0xff]   ;;  %v983_v47 = vld [vmem:[#allocation6 + $0x10] sm:$0xff]  ;;  %v906_v6 = vsub.s32 0, %v2475_v5 }
 0x181   : > { %821 = vmatpush1.bf16.msra.mxu0 %v1844_v13  ;;  %v1879_v40 = vld [vmem:[%s2381_s16 + $0xcc] ss:$16 sps:$4 sm:$0xff]   ;;  %v1881_v41 = vld [vmem:[%s2381_s16 + $0xc8] ss:$16 sps:$4 sm:$0xff]   ;;  %v985_v50 = vld [vmem:[#allocation6 + $0x20] sm:$0xff]  ;;  %v910_v8 = vsub.s32 1, %v2475_v5 }
 0x182   : > { %822 = vmatprep.subr.bf16.mxu0 %v1845_v14  ;;  %864 = vmatpush1.bf16.msra.mxu1 %v1869_v33  ;;  %v1882_v42 = vld [vmem:[%s2381_s16 + $0xec] ss:$16 sps:$4 sm:$0xff]   ;;  %v1884_v45 = vld [vmem:[%s2381_s16 + $0xe8] ss:$16 sps:$4 sm:$0xff]   ;;  %v987_v53 = vld [vmem:[#allocation6 + $0x30] sm:$0xff]  ;;  %vm936_vm3 = vcmask 130048  }
 0x183   : > { %865 = vmatprep.subr.bf16.mxu1 %v1870_v34  ;;  %v982_v44 = vld [vmem:[#allocation6 + $0x8] sm:$0xff]  ;;  %v984_v48 = vld [vmem:[#allocation6 + $0x18] sm:$0xff]  ;;  %v989_v56 = vld [vmem:[#allocation6 + $0x40] sm:$0xff]  ;;  %s2114_s22 = smov [#allocation10]   ;;  %p1790_p0 = scmp.eq.s32.totalorder %s2196_s21, 1 }
 0x184   : > { %v2463_v46 = vpack.c.bf16 %v982_v44, %v981_v43  ;;  %v2466_v49 = vpack.c.bf16 %v984_v48, %v983_v47  ;;  %v986_v51 = vld [vmem:[#allocation6 + $0x28] sm:$0xff]  ;;  %v988_v54 = vld [vmem:[#allocation6 + $0x38] sm:$0xff]  ;;  %v991_v59 = vld [vmem:[#allocation6 + $0x50] sm:$0xff] }
 0x185   : > { %823 = vmatpush1.bf16.msra.mxu0 %v1847_v15  ;;  %v2470_v52 = vpack.c.bf16 %v986_v51, %v985_v50  ;;  %v1699_v55 = vpack.c.bf16 %v988_v54, %v987_v53  ;;  %v990_v57 = vld [vmem:[#allocation6 + $0x48] sm:$0xff]  ;;  %v992_v60 = vld [vmem:[#allocation6 + $0x58] sm:$0xff]  ;;  %v993_v62 = vld [vmem:[#allocation6 + $0x60] sm:$0xff] }
 0x186   : > { %824 = vmatprep.subr.bf16.mxu0 %v1848_v16  ;;  %866 = vmatpush1.bf16.msra.mxu1 %v1872_v35  ;;  %v1703_v58 = vpack.c.bf16 %v990_v57, %v989_v56  ;;  %v1707_v61 = vpack.c.bf16 %v992_v60, %v991_v59  ;;  %v994_v63 = vld [vmem:[#allocation6 + $0x68] sm:$0xff]  ;;  %v995_v1 = vld [vmem:[#allocation6 + $0x70] sm:$0xff]  ;;  %v996_v2 = vld [vmem:[#allocation6 + $0x78] sm:$0xff] }
 0x187   : > { %867 = vmatprep.subr.bf16.mxu1 %v1873_v36  ;;  %v1711_v0 = vpack.c.bf16 %v994_v63, %v993_v62  ;;  %v1715_v3 = vpack.c.bf16 %v996_v2, %v995_v1  ;;  %v902_v7 = vld [vmem:[%s2399_s26] sm:$0x3]  ;;  %v2486_v28 = vld [vmem:[#allocation2 + $0x8] sm:$0xff]  ;;  %v1896_v48 = vld [vmem:[%s2410_s14 + $0x34] ss:$8 sps:$4 sm:$0xff]  }
 0x188   : > { %v907_v10 = vrot.slane %v902_v7, %v906_v6  ;;  %v911_v11 = vrot.slane %v902_v7, %v910_v8  ;;  %v1860_v35 = vld [vmem:[%s2630_s25] sm:$0xff]   ;;  %v1906_v56 = vld [vmem:[%s2410_s14 + $0x70] ss:$8 sps:$4 sm:$0xff]  }
 0x189   : > { %825 = vmatpush1.bf16.msra.mxu0 %v1850_v17  ;;  %v1887_v36 = vld [vmem:[%s2410_s14 + $0x4] ss:$8 sps:$4 sm:$0xff]   ;;  %v1891_v47 = vld [vmem:[%s2410_s14 + $0x20] ss:$8 sps:$4 sm:$0xff]  }
 0x18a   : > { %826 = vmatprep.subr.bf16.mxu0 %v1851_v18  ;;  %868 = vmatpush1.bf16.msra.mxu1 %v1875_v37  ;;  %v1899_v50 = vld [vmem:[%s2410_s14 + $0x44] ss:$8 sps:$4 sm:$0xff]   ;;  %v1897_v51 = vld [vmem:[%s2410_s14 + $0x40] ss:$8 sps:$4 sm:$0xff]  }
 0x18b   : > { %869 = vmatprep.subr.bf16.mxu1 %v1876_v38  ;;  %v1885_v38 = vld [vmem:[%s2410_s14] ss:$8 sps:$4 sm:$0xff]   ;;  %v1905_v53 = vld [vmem:[%s2410_s14 + $0x64] ss:$8 sps:$4 sm:$0xff]  }
 0x18c   : > { %v1903_v54 = vld [vmem:[%s2410_s14 + $0x60] ss:$8 sps:$4 sm:$0xff]  }
 0x18d   : > { %827 = vmatpush1.bf16.msra.mxu0 %v1853_v19 }
 0x18e   : > { %828 = vmatprep.subr.bf16.mxu0 %v1854_v20  ;;  %870 = vmatpush1.bf16.msra.mxu1 %v1878_v39 }
 0x18f   : > { %871 = vmatprep.subr.bf16.mxu1 %v1879_v40 }
 0x191   : > { %829 = vmatpush1.bf16.msra.mxu0 %v1856_v21 }
 0x192   : > { %830 = vmatprep.subr.bf16.mxu0 %v1857_v22  ;;  %872 = vmatpush1.bf16.msra.mxu1 %v1881_v41  ;;  %v2484_v22 = vld [vmem:[#allocation2] sm:$0xff]  ;;  %v1890_v41 = vld [vmem:[%s2410_s14 + $0x14] ss:$8 sps:$4 sm:$0xff]  }
 0x193   : > { %873 = vmatprep.subr.bf16.mxu1 %v1882_v42 }
 0x195   : > { %831 = vmatpush1.bf16.msra.mxu0 %v1859_v23 }
 0x196   : > { %1611 = vmatprep.subr.bf16.mxu0 %v2112_v27  ;;  %874 = vmatpush1.bf16.msra.mxu1 %v1884_v45  ;;  %v1888_v45 = vld [vmem:[%s2410_s14 + $0x10] ss:$8 sps:$4 sm:$0xff]  }
 0x197   : > { %1688 = vmatprep.subr.bf16.mxu1 %v2463_v46 }
 0x198   : > { %849 = vmatmul.mubr.bf16.vlgmr.msra.gmra.mrb[0].mxu0 %v623_v26 }
 0x199   : > { %1613 = vmatprep.mubr.msk.bf16.mxu0 %vm2113_vm2, %v2112_v27  ;;  %892 = vmatmul.mubr.bf16.vlgmr.msra.gmra.mrb[0].mxu1 %v623_v26 }
 0x19a   : > { %1690 = vmatpush3.bf16.msra.mxu1 %v2463_v46 }
 0x19b   : > { %1692 = vmatprep.subr.bf16.mxu1 %v2466_v49 }
 0x19e   : > { %1694 = vmatpush3.bf16.msra.mxu1 %v2466_v49 }
 0x19f   : > { %1696 = vmatprep.subr.bf16.mxu1 %v2470_v52 }
 0x1a2   : > { %1698 = vmatpush3.bf16.msra.mxu1 %v2470_v52 }
 0x1a3   : > { %1700 = vmatprep.subr.bf16.mxu1 %v1699_v55 }
 0x1a6   : > { %1702 = vmatpush3.bf16.msra.mxu1 %v1699_v55 }
 0x1a7   : > { %1704 = vmatprep.subr.bf16.mxu1 %v1703_v58 }
 0x1aa   : > { %1706 = vmatpush3.bf16.msra.mxu1 %v1703_v58 }
 0x1ab   : > { %1708 = vmatprep.subr.bf16.mxu1 %v1707_v61 }
 0x1ae   : > { %1710 = vmatpush3.bf16.msra.mxu1 %v1707_v61 }
 0x1af   : > { %1712 = vmatprep.subr.bf16.mxu1 %v1711_v0 }
 0x1b2   : > { %1714 = vmatpush3.bf16.msra.mxu1 %v1711_v0 }
 0x1b3   : > { %1716 = vmatprep.subr.bf16.mxu1 %v1715_v3 }
 0x1b6   : > { %1718 = vmatpush3.bf16.msra.mxu1 %v1715_v3 }
 0x1b7   : > { %1276 = vmatprep.subr.bf16.mxu1 %v1887_v36 }
 0x26b   : > { %v850_v12 = vpop.f32.mrb[0].mxu0 }
 0x26c   : > { %v914_v13 = vadd.f32 %v907_v10, %v850_v12  ;;  %v852_v14 = vpop.f32.mrb[1].mxu0 }
 0x26d   : > { %v915_v15 = vadd.f32 %v911_v11, %v852_v14  ;;  %v854_v16 = vpop.f32.mrb[2].mxu0  ;;  %v1542_v14 = vld [vmem:[%s518_s0] ss:$0 sm:$0xff] }
 0x26e   : > { %v918_v17 = vmax.f32 %v914_v13, 0.0  ;;  %v916_v18 = vadd.f32 %v907_v10, %v854_v16  ;;  %v856_v19 = vpop.f32.mrb[3].mxu0  ;;  %v1541_v10 = vld [vmem:[%s515_s12] ss:$0 sm:$0xff]  ;;  %s1351_s12 = sshll.u32 %s2114_s22, 4  ;;  %s1352_s12 = int_to_ptr.vmem [resolvable:$true] %s1351_s12 }
 0x26f   : > { %v919_v20 = vmax.f32 %v915_v15, 0.0  ;;  %v917_v21 = vadd.f32 %v911_v11, %v856_v19  ;;  %p2036_p12 = scmp.lt.s32.totalorder %s1352_s12, %s1352_s12 }
 0x270   : > { %v920_v23 = vmax.f32 %v916_v18, 0.0 }
 0x271   : > { %v922_v26 = vsub.f32 %v919_v20, %v918_v17  ;;  %v921_v27 = vmax.f32 %v917_v21, 0.0  ;;  %v1319_v20 = vld [vmem:[%s2404_s1] sm:$0x3]  ;;  %s2029_s1 = scalar_lea.vmem %s1352_s12, 256 }
 0x272   : > { %v1324_v21 = vrot.slane %v1319_v20, %v906_v6  ;;  %p2030_p8 = scmp.ne.s32.totalorder %s1352_s12, %s2029_s1  ;;  %p2037_p11 = scmp.lt.s32.totalorder %s2029_s1, %s2029_s1 }
 0x273   : > { %v924_v29 = vmul.f32 %v922_v26, %v2484_v22  ;;  %v923_v30 = vsub.f32 %v921_v27, %v920_v23 }
 0x274   : > { %p2031_p2 = pnand %p2030_p8, %p1790_p0  ;;  %p2038_p7 = por %p2037_p11, %p2036_p12 }
 0x275   : > { %v926_v31 = vadd.f32 %v924_v29, %v918_v17  ;;  %v925_v32 = vmul.f32 %v923_v30, %v2486_v28 }
 0x276   : > { %p2032_p4 = pneg %p2031_p2 }
 0x277   : > { %v927_v33 = vadd.f32 %v925_v32, %v920_v23  ;;  %v1328_v23 = vrot.slane %v1319_v20, %v910_v8 }
 0x278   : > { %p2039_p13 = pnand %p2038_p7, %p2032_p4 }
 0x279   : > { %v930_v34 = vpack.c.bf16 %v927_v33, %v926_v31 }
 0x27b   : > { %1612 = vmatpush3.bf16.msra.mxu0 %v930_v34 }
 0x27c   : > { %1720 = vmatprep.subr.bf16.mxu0 %v2463_v46 }
 0x27e   : > { %1614 = vmatmul.mubr.msk.bf16.vlgmr.msra.gmra.mrb[4].mxu0 %vm936_vm3, %v1860_v35 }
 0x27f   : > { %1722 = vmatpush3.bf16.msra.mxu0 %v2463_v46  ;;  %v1893_v46 = vld [vmem:[%s2410_s14 + $0x24] ss:$8 sps:$4 sm:$0xff]  }
 0x280   : > { %1724 = vmatprep.subr.bf16.mxu0 %v2466_v49 }
 0x283   : > { %1726 = vmatpush3.bf16.msra.mxu0 %v2466_v49  ;;  %v1894_v49 = vld [vmem:[%s2410_s14 + $0x30] ss:$8 sps:$4 sm:$0xff]  }
 0x284   : > { %1728 = vmatprep.subr.bf16.mxu0 %v2470_v52 }
 0x287   : > { %1730 = vmatpush3.bf16.msra.mxu0 %v2470_v52  ;;  %v1900_v52 = vld [vmem:[%s2410_s14 + $0x50] ss:$8 sps:$4 sm:$0xff]  }
 0x288   : > { %1732 = vmatprep.subr.bf16.mxu0 %v1699_v55 }
 0x28b   : > { %1734 = vmatpush3.bf16.msra.mxu0 %v1699_v55  ;;  %v1908_v55 = vld [vmem:[%s2410_s14 + $0x74] ss:$8 sps:$4 sm:$0xff]  }
 0x28c   : > { %1736 = vmatprep.subr.bf16.mxu0 %v1703_v58 }
 0x28f   : > { %1738 = vmatpush3.bf16.msra.mxu0 %v1703_v58 }
 0x290   : > { %1740 = vmatprep.subr.bf16.mxu0 %v1707_v61 }
 0x293   : > { %1742 = vmatpush3.bf16.msra.mxu0 %v1707_v61 }
 0x294   : > { %1744 = vmatprep.subr.bf16.mxu0 %v1711_v0 }
 0x297   : > { %1746 = vmatpush3.bf16.msra.mxu0 %v1711_v0 }
 0x298   : > { %1748 = vmatprep.subr.bf16.mxu0 %v1715_v3 }
 0x29b   : > { %1750 = vmatpush3.bf16.msra.mxu0 %v1715_v3 }
 0x351   : > { %v974_v37 = vpop.f32.mrb[4].mxu0 }
 0x352   : > { %v1072_v39 = vmul.f32 %v974_v37, %v974_v37  ;;  %v1615_v40 = vpop.f32.mrb[5].mxu0  ;;  %1649 = vmatprep.mubr.f32.mxu1 %v974_v37 }
 0x353   : > { %v977_v42 = vpop.f32.mrb[6].mxu0 }
 0x354   : > { %v1073_v43 = vmul.f32 %v977_v42, %v977_v42  ;;  %1650 = vmatmul.mubr.f32.vlgmr.msra.gmra.mrb[4].mxu1 %v977_v42  ;;  %1684 = vmatprep.mubr.f32.mxu0 %v1072_v39  ;;  %v1616_v44 = vpop.f32.mrb[7].mxu0 }
 0x355   : > { %1277 = vmatpush1.bf16.msra.mxu1 %v1885_v38  ;;  %1308 = vmatprep.mubr.bf16.mxu1 %v2111_v9  ;;  %v1902_v9 = vld [vmem:[%s2410_s14 + $0x54] ss:$8 sps:$4 sm:$0xff]  }
 0x356   : > { %1685 = vmatmul.mubr.f32.vlgmr.msra.gmra.mrb[8].mxu0 %v1073_v43  ;;  %1278 = vmatprep.subr.bf16.mxu1 %v1890_v41 }
 0x359   : > { %1279 = vmatpush1.bf16.msra.mxu1 %v1888_v45 }
 0x35a   : > { %1280 = vmatprep.subr.bf16.mxu1 %v1893_v46 }
 0x35d   : > { %1281 = vmatpush1.bf16.msra.mxu1 %v1891_v47 }
 0x35e   : > { %1282 = vmatprep.subr.bf16.mxu1 %v1896_v48 }
 0x361   : > { %1283 = vmatpush1.bf16.msra.mxu1 %v1894_v49 }
 0x362   : > { %1284 = vmatprep.subr.bf16.mxu1 %v1899_v50 }
 0x365   : > { %1285 = vmatpush1.bf16.msra.mxu1 %v1897_v51 }
 0x366   : > { %1286 = vmatprep.subr.bf16.mxu1 %v1902_v9 }
 0x369   : > { %1287 = vmatpush1.bf16.msra.mxu1 %v1900_v52 }
 0x36a   : > { %1288 = vmatprep.subr.bf16.mxu1 %v1905_v53 }
 0x36d   : > { %1289 = vmatpush1.bf16.msra.mxu1 %v1903_v54 }
 0x36e   : > { %1290 = vmatprep.subr.bf16.mxu1 %v1908_v55 }
 0x371   : > { %1291 = vmatpush1.bf16.msra.mxu1 %v1906_v56 }
 0x427   : > { %v1651_v57 = vpop.f32.mrb[4].mxu1 }
 0x428   : > { %v1150_v58 = vmul.f32 %v1651_v57, %v1651_v57  ;;  %v1154_v59 = vsub.f32 %v977_v42, %v1651_v57  ;;  %v1063_v60 = vpop.f32.mrb[5].mxu1 }
 0x429   : > { %v1149_v61 = vmul.f32 %v1063_v60, %v1063_v60  ;;  %v1153_v62 = vsub.f32 %v974_v37, %v1063_v60  ;;  %v1686_v63 = vpop.f32.mrb[8].mxu0 }
 0x42a   : > { %v1152_v0 = vsub.f32 %v1686_v63, %v1150_v58  ;;  %v1140_v1 = vpop.f32.mrb[9].mxu0 }
 0x42b   : > { %v1151_v2 = vsub.f32 %v1140_v1, %v1149_v61 }
 0x42c   : > { %v1156_v3 = vadd.f32 1e-05, %v1152_v0 }
 0x42d   : > { %v1155_v4 = vadd.f32 1e-05, %v1151_v2 }
 0x42e   : > { %1909 = vrsqrt.f32 %v1156_v3 }
 0x42f   : > { %1911 = vrsqrt.f32 %v1155_v4 }
 0x438   : > { %v1910_v7 = vpop.eup %1909 }
 0x439   : > { %v1912_v11 = vpop.eup %1911  ;;  %v1160_v12 = vmul.f32 %v1910_v7, %v1154_v59 }
 0x43a   : > { %v1159_v13 = vmul.f32 %v1912_v11, %v1153_v62 }
 0x43b   : > { %v1169_v15 = vmul.f32 %v1541_v10, %v1160_v12 }
 0x43c   : > { %v1168_v16 = vmul.f32 %v1541_v10, %v1159_v13 }
 0x43d   : > { %v1178_v17 = vadd.f32 %v1542_v14, %v1169_v15 }
 0x43e   : > { %v1177_v18 = vadd.f32 %v1542_v14, %v1168_v16 }
 0x440   : > { %v1179_v19 = vpack.c.bf16 %v1178_v17, %v1177_v18 }
 0x442   : > { %1309 = vmatmul.mubr.bf16.vlgmr.msra.gmra.mrb[0].mxu1 %v1179_v19 }
 0x515   : > { %v1310_v26 = vpop.f32.mrb[0].mxu1 }
 0x516   : > { %v1331_v27 = vadd.f32 %v1324_v21, %v1310_v26  ;;  %v1312_v29 = vpop.f32.mrb[1].mxu1 }
 0x517   : > { %v1332_v30 = vadd.f32 %v1328_v23, %v1312_v29  ;;  %v1314_v31 = vpop.f32.mrb[2].mxu1 }
 0x518   : > { %v1333_v32 = vadd.f32 %v1324_v21, %v1314_v31  ;;  %v1316_v33 = vpop.f32.mrb[3].mxu1 }
 0x519   : > { %v1335_v34 = vsub.f32 %v1332_v30, %v1331_v27  ;;  %v1334_v35 = vadd.f32 %v1328_v23, %v1316_v33 }
 0x51b   : > { %v1337_v36 = vmul.f32 %v1335_v34, %v2484_v22  ;;  %v1336_v37 = vsub.f32 %v1334_v35, %v1333_v32 }
 0x51d   : > { %v1339_v38 = vadd.f32 %v1337_v36, %v1331_v27  ;;  %v1338_v6 = vmul.f32 %v1336_v37, %v2486_v28 }
 0x51f   : > { %v1341_v5 = vadd.f32 %v1339_v38, %v2441_v24  ;;  %v1340_v8 = vadd.f32 %v1338_v6, %v1333_v32 }
 0x521   : > { %1343 = vst [vmem:[#allocation10] sm:$0xff] %v1341_v5  ;;  %v1342_v39 = vadd.f32 %v1340_v8, %v2443_v25 }
 0x523   : > { %1344 = vst [vmem:[#allocation10 + $0x8] sm:$0xff] %v1342_v39 }
 0x524   : > { %2042 = shalt.err (!%p2039_p13)
}
 0x525   : > { %s2631_s14 = sld [smem:[#allocation21_spill]] }
 0x52b   : > { %s2043_s15 = scalar_lea.hbm %s2631_s14, 256 }
 0x52c   : > { %p2044_p5 = scmp.ne.s32.totalorder %s2631_s14, %s2043_s15  ;;  %p2049_p9 = scmp.lt.u32.totalorder %s2043_s15, %s2631_s14 }
 0x52e   : > { %p2045_p10 = pnand %p2044_p5, %p1790_p0 }
 0x530   : > { %p2046_p1 = pneg %p2045_p10 }
 0x532   : > { %p2051_p3 = pnand %p2049_p9, %p2046_p1 }
 0x534   : > { %2054 = shalt.err (!%p2051_p3)
}
 0x535   : > { %s2115_s17 = smov 128   ;;  %s2116_s13 = smov 8  }
 0x536   : > { %1768 = dma.vmem_to_hbm [thread:$0]  (%p1790_p0), %s1352_s12, 256, %s2631_s14, [#allocation5], %s2115_s17, %s2115_s17, %s2116_s13  }
 0x537   : > { %2084 = dma.done.wait (%p1790_p0), [#allocation5], 256  }
 0x538   : > { %2086 = vsyncadd (%p1790_p0), [#allocation5], 4294967040 }
 0x539 PF: > { %s2632_s20 = sld [smem:[#allocation15_spill]]  ;;  %s2633_s25 = sld [smem:[#allocation16_spill]] }
 0x53a   : > { %s2634_s17 = smov %s2093_s18  ;;  %s2635_s18 = smov %s2097_s19 }
 0x53f   : > { %p21_p6 = scmp.ge.s32.totalorder %s2632_s20, 4   ;;  %s2636_s19 = smov %s2633_s25 }
 0x541   :  { %23 = sbr.rel (!%p21_p6) target bundleno = 10 (0xa), region = 135 }
 0x548   :  { %1367 = vsyncpa [#allocation4], 1 }
 0x549   :  { %1369 = vsyncpa [#allocation4 + $0x1], 1 }
 0x54a   :  { %1370 = vsyncpa [#allocation7], 1 }
 0x54b   :  { %1371 = vsyncpa [#allocation5], 1 }
 0x54c   :  { %1373 = vsyncpa [#allocation5 + $0x1], 1 }

// kernel: tpu_custom_call.1
= control target key start
LH: loop header
LB: loop body
LE: loop exit
PB: predicated region body
PF: predicated region fallthrough
CT: control target
= control target key end

     0   :  { %s2571_s0 = inlined_call_operand.hbm [shape: f32[16,128], index: 0, kind: input, shape index: {}, may-alias: {0,11}]   ;;  %s2572_s1 = inlined_call_operand.vmem [shape: f32[16,4], index: 1, kind: input, shape index: {}]   ;;  %s2573_s2 = inlined_call_operand.vmem [shape: f32[4,128], index: 2, kind: input, shape index: {}]   ;;  %s2574_s3 = inlined_call_operand.vmem [shape: bf16[16,16], index: 3, kind: input, shape index: {}]   ;;  %s2575_s4 = inlined_call_operand.hbm [shape: f32[128,128], index: 4, kind: input, shape index: {}]   ;;  %s2576_s5 = inlined_call_operand.hbm [shape: bf16[2,128,512], index: 5, kind: input, shape index: {}]   ;;  %s2577_s6 = inlined_call_operand.vmem [shape: f32[2,1,256], index: 6, kind: input, shape index: {}]   ;;  %s2578_s7 = inlined_call_operand.hbm [shape: bf16[2,128,256], index: 7, kind: input, shape index: {}]   ;;  %s2579_s8 = inlined_call_operand.vmem [shape: f32[2,1,256], index: 8, kind: input, shape index: {}]   ;;  %s2580_s9 = inlined_call_operand.vmem [shape: f32[2,1,128], index: 9, kind: input, shape index: {}]   ;;  %s2581_s10 = inlined_call_operand.vmem [shape: f32[2,1,128], index: 10, kind: input, shape index: {}]   ;;  %s2582_s11 = inlined_call_operand.hbm [shape: f32[16,128], index: 11, kind: output, shape index: {}, may-alias: {0,11}]  }
   0x1   :  { %2598 = sst [smem:[#allocation17_spill]] %s2571_s0 }
   0x2   :  { %2599 = sst [smem:[#allocation18_spill]] %s2572_s1 }
   0x3   :  { %2600 = sst [smem:[#allocation19_spill]] %s2573_s2 }
   0x4   :  { %2601 = sst [smem:[#allocation20_spill]] %s2574_s3 }
   0x5   :  { %2602 = sst [smem:[#allocation21_spill]] %s2582_s11 }
   0x6   :  { %16 = vsyncpa [#allocation4], 0 }
   0x7   :  { %17 = vsyncpa [#allocation7], 0 }
   0x8   :  { %18 = vsyncpa [#allocation5], 0  ;;  %s2177_s17 = smov 0   ;;  %s2179_s18 = smov 0  }
   0x9   :  { %s2181_s19 = smov 0   ;;  %s2183_s20 = smov 0  }
   0xa LB: > { %s2196_s21 = sadd.s32 4294967295, %s2101_s20   ;;  %s2199_s22 = sadd.s32 1, %s2101_s20   ;;  %s2101_s20 = sphi %s2183_s20, %s2632_s20   ;;  %s2097_s19 = sphi %s2181_s19, %s2636_s19   ;;  %s2093_s18 = sphi %s2179_s18, %s2635_s18   ;;  %s2089_s17 = sphi %s2177_s17, %s2634_s17  }
   0xb   : > { %2603 = sst [smem:[#allocation15_spill]] %s2199_s22  ;;  %s133_s23 = ssub.s32 %s2101_s20, %s2199_s22 }
   0xc   : > { %s136_s24 = sadd.s32 1, %s2097_s19  ;;  %p134_p0 = scmp.eq.s32.totalorder %s133_s23, 0 }
   0xd   : > { %p143_p1 = scmp.ne.s32.totalorder %s2097_s19, %s2093_s18  ;;  %p144_p2 = scmp.eq.s32.totalorder %s2101_s20, 0 }
   0xe   : > { %p149_p3 = scmp.ne.s32.totalorder %s2093_s18, %s2089_s17  ;;  %p2583_p5 = scmp.eq.s32.totalorder %s2196_s21, 0 }
   0xf   : > { %s2209_s25 = scalar_select %p134_p0, %s2097_s19, %s136_s24  }
  0x10   : > { %p2211_p4 = por %p144_p2, %p143_p1  ;;  %p1486_p6 = scmp.ge.s32.totalorder %s2101_s20, 1 }
  0x11   : > { %2604 = sst [smem:[#allocation16_spill]] %s2209_s25  ;;  %p311_p7 = scmp.lt.s32.totalorder %s2101_s20, 3 }
  0x12   : > { %p2220_p8 = por %p2583_p5, %p149_p3  ;;  %s2103_s29 = smov [#allocation3]  }
  0x13   : > { %p2225_p10 = pnand %p1486_p6, %p311_p7  ;;  %s323_s30 = sshll.u32 %s2103_s29, 4  ;;  %s324_s30 = int_to_ptr.vmem [resolvable:$true] %s323_s30 }
  0x14   : > { %s2606_s27 = scalar_select %p2220_p8, 1, 0 }
  0x15   : > { %s2607_s28 = scalar_select %p2225_p10, 1, 0 }
  0x16   : > { %p1771_p11 = pneg %p2225_p10  ;;  %p1787_p13 = scmp.lt.s32.totalorder %s2101_s20, 2 }
  0x17   : > { %s359_s13 = sand.u32 1, %s2101_s20   ;;  %s2610_s0 = sld [smem:[#allocation17_spill]] }
  0x18   : > { %p2233_p12 = pnand %p1771_p11, %p2583_p5  ;;  %p2242_p0 = pnand %p1787_p13, %p2211_p4 }
  0x1a   : > { %s2609_s15 = scalar_select %p2242_p0, 1, 0 }
  0x1b   : > { %p2591_p2 = pneg %p2233_p12 }
  0x1d   : > { %s1913_s23 = scalar_lea.hbm %s2610_s0, 256 }
  0x1e   : > { %p1914_p1 = scmp.ne.s32.totalorder %s2610_s0, %s1913_s23  ;;  %p1920_p4 = scmp.lt.u32.totalorder %s1913_s23, %s2610_s0 }
  0x20   : > { %p1916_p3 = pnand %p2591_p2, %p1914_p1 }
  0x22   : > { %p1917_p6 = pneg %p1916_p3 }
  0x24   : > { %p1922_p7 = pnand %p1920_p4, %p1917_p6 }
  0x26   : > { %1925 = shalt.err (!%p1922_p7)
}
  0x27   : > { %s1926_s25 = scalar_lea.vmem %s324_s30, 256  ;;  %p1934_p5 = scmp.lt.s32.totalorder %s324_s30, %s324_s30 }
  0x28   : > { %p1927_p11 = scmp.ne.s32.totalorder %s324_s30, %s1926_s25  ;;  %p1935_p8 = scmp.lt.s32.totalorder %s1926_s25, %s1926_s25 }
  0x2a   : > { %p1929_p13 = pnand %p1927_p11, %p2591_p2  ;;  %p1936_p10 = por %p1935_p8, %p1934_p5 }
  0x2c   : > { %p1930_p9 = pneg %p1929_p13 }
  0x2e   : > { %p1937_p0 = pnand %p1936_p10, %p1930_p9 }
  0x30   : > { %1940 = shalt.err (!%p1937_p0)
}
  0x31   : > { %s2592_s16 = smov 128   ;;  %s2594_s14 = smov 8  }
  0x32   : > { %1774 = dma.hbm_to_vmem [thread:$0]  (!%p2233_p12), %s2610_s0, 256, %s324_s30, [#allocation4], %s2592_s16, %s2592_s16, %s2594_s14  }
  0x33   : > { %s2611_s24 = sand.u32 1, %s2097_s19   ;;  %s1563_s29 = sshll.u32 %s2101_s20, 12 }
  0x34   : > { %s1490_s25 = sshll.u32 %s2611_s24, 8  ;;  %s2277_s11 = scalar_lea.hbm %s2576_s5, %s1563_s29 }
  0x35   : > { %s363_s3 = scalar_lea.vmem [#allocation8], %s1490_s25  ;;  %s2281_s2 = scalar_lea.sflag [#allocation4], %s359_s13 }
  0x36   : > { %s370_s1 = sshll.u32 %s363_s3, 4  ;;  %s1941_s17 = scalar_lea.hbm %s2277_s11, 4096  ;;  %s2279_s1 = int_to_ptr.vmem [resolvable:$true] %s370_s1 }
  0x37   : > { %p1942_p5 = scmp.ne.s32.totalorder %s2277_s11, %s1941_s17  ;;  %p2612_p8 = scmp.ne.s32.totalorder %s2609_s15, 0 }
  0x38   : > { %s1946_s23 = scalar_lea.hbm %s2576_s5, 8192  ;;  %p1947_p1 = scmp.lt.u32.totalorder %s2277_s11, %s2576_s5 }
  0x39   : > { %p2596_p9 = pneg %p2612_p8  ;;  %p1948_p3 = scmp.lt.u32.totalorder %s1946_s23, %s1941_s17 }
  0x3a   : > { %p1950_p4 = scmp.lt.u32.totalorder %s1941_s17, %s2277_s11 }
  0x3b   : > { %p1944_p10 = pnand %p2596_p9, %p1942_p5  ;;  %p1949_p6 = por %p1948_p3, %p1947_p1 }
  0x3d   : > { %p1945_p0 = pneg %p1944_p10  ;;  %p1951_p7 = por %p1950_p4, %p1949_p6 }
  0x3f   : > { %p1952_p11 = pnand %p1951_p7, %p1945_p0 }
  0x41   : > { %1955 = shalt.err (!%p1952_p11)
}
  0x42   : > { %s1956_s3 = scalar_lea.vmem %s2279_s1, 4096  ;;  %s2106_s13 = smov [#allocation8]  }
  0x43   : > { %p1957_p13 = scmp.ne.s32.totalorder %s2279_s1, %s1956_s3  ;;  %s1961_s25 = sshll.u32 %s2106_s13, 4  ;;  %s1962_s25 = int_to_ptr.vmem [resolvable:$false] %s1961_s25 }
  0x44   : > { %s1963_s26 = scalar_lea.vmem %s1962_s25, 8192  ;;  %p1964_p2 = scmp.lt.s32.totalorder %s2279_s1, %s1962_s25 }
  0x45   : > { %p1959_p5 = pnand %p1957_p13, %p2596_p9  ;;  %p1965_p1 = scmp.lt.s32.totalorder %s1963_s26, %s1956_s3 }
  0x47   : > { %p1960_p10 = pneg %p1959_p5  ;;  %p1966_p3 = por %p1965_p1, %p1964_p2 }
  0x49   : > { %p1967_p6 = pnand %p1966_p3, %p1960_p10 }
  0x4b   : > { %1970 = shalt.err (!%p1967_p6)
}
  0x4c   : > { %s2107_s17 = smov 256   ;;  %s2108_s22 = smov 16  }
  0x4d   : > { %1781 = dma.hbm_to_vmem [thread:$0]  (!%p2612_p8), %s2277_s11, 4096, %s2279_s1, %s2281_s2, %s2107_s17, %s2107_s17, %s2108_s22  }
  0x4e   : > { %s2613_s30 = sand.u32 1, %s2097_s19   ;;  %s2109_s24 = smov [#allocation6]  }
  0x4f   : > { %s1493_s23 = sshll.u32 %s2613_s30, 7  ;;  %s345_s29 = sshll.u32 %s2109_s24, 4  ;;  %s346_s29 = int_to_ptr.vmem [resolvable:$true] %s345_s29 }
  0x50   : > { %s1564_s3 = sshll.u32 %s2101_s20, 11  ;;  %s1971_s26 = scalar_lea.hbm %s2575_s4, 2048 }
  0x51   : > { %p1972_p2 = scmp.ne.s32.totalorder %s2575_s4, %s1971_s26  ;;  %p2614_p0 = pneg %p2233_p12 }
  0x52   : > { %p1978_p11 = scmp.lt.u32.totalorder %s1971_s26, %s2575_s4 }
  0x53   : > { %p1974_p4 = pnand %p1972_p2, %p2614_p0 }
  0x55   : > { %p1975_p7 = pneg %p1974_p4 }
  0x57   : > { %p1980_p13 = pnand %p1978_p11, %p1975_p7 }
  0x59   : > { %1983 = shalt.err (!%p1980_p13)
}
  0x5a   : > { %s1984_s11 = scalar_lea.vmem %s346_s29, 2048  ;;  %p2615_p10 = pmov %p2614_p0 }
  0x5b   : > { %p1985_p5 = scmp.ne.s32.totalorder %s346_s29, %s1984_s11  ;;  %p1992_p6 = scmp.lt.s32.totalorder %s346_s29, %s346_s29 }
  0x5c   : > { %p1993_p9 = scmp.lt.s32.totalorder %s1984_s11, %s1984_s11 }
  0x5d   : > { %p1987_p1 = pnand %p1985_p5, %p2615_p10 }
  0x5e   : > { %p1994_p8 = por %p1993_p9, %p1992_p6 }
  0x5f   : > { %p1988_p3 = pneg %p1987_p1 }
  0x61   : > { %p1995_p0 = pnand %p1994_p8, %p1988_p3 }
  0x63   : > { %1998 = shalt.err (!%p1995_p0)
}
  0x64   : > { %s2616_s20 = smov 8   ;;  %s2617_s16 = smov 128  }
  0x65   : > { %1777 = dma.hbm_to_vmem [thread:$0]  (!%p2233_p12), %s2575_s4, 2048, %s346_s29, [#allocation7], %s2617_s16, %s2617_s16, %s2616_s20  }
  0x66   : > { %s2338_s30 = scalar_lea.hbm %s2578_s7, %s1564_s3  ;;  %s391_s24 = scalar_lea.vmem [#allocation9], %s1493_s23 }
  0x67   : > { %s398_s13 = sshll.u32 %s391_s24, 4  ;;  %s1999_s12 = scalar_lea.hbm %s2338_s30, 2048  ;;  %s2340_s13 = int_to_ptr.vmem [resolvable:$true] %s398_s13 }
  0x68   : > { %p2000_p8 = scmp.ne.s32.totalorder %s2338_s30, %s1999_s12  ;;  %p2618_p9 = scmp.ne.s32.totalorder %s2609_s15, 0 }
  0x69   : > { %s2004_s26 = scalar_lea.hbm %s2578_s7, 4096  ;;  %p2005_p12 = scmp.lt.u32.totalorder %s2338_s30, %s2578_s7 }
  0x6a   : > { %p2619_p2 = pneg %p2618_p9  ;;  %p2006_p11 = scmp.lt.u32.totalorder %s2004_s26, %s1999_s12 }
  0x6b   : > { %p2008_p5 = scmp.lt.u32.totalorder %s1999_s12, %s2338_s30 }
  0x6c   : > { %p2002_p4 = pnand %p2000_p8, %p2619_p2  ;;  %p2007_p13 = por %p2006_p11, %p2005_p12 }
  0x6e   : > { %p2003_p7 = pneg %p2002_p4  ;;  %p2009_p10 = por %p2008_p5, %p2007_p13 }
  0x70   : > { %p2010_p1 = pnand %p2009_p10, %p2003_p7 }
  0x72   : > { %2013 = shalt.err (!%p2010_p1)
}
  0x73   : > { %s2014_s23 = scalar_lea.vmem %s2340_s13, 2048  ;;  %p2620_p6 = pmov %p2619_p2 }
  0x74   : > { %p2015_p3 = scmp.ne.s32.totalorder %s2340_s13, %s2014_s23  ;;  %s2110_s11 = smov [#allocation9]  }
  0x75   : > { %s2019_s0 = sshll.u32 %s2110_s11, 4  ;;  %s2020_s0 = int_to_ptr.vmem [resolvable:$false] %s2019_s0 }
  0x76   : > { %p2017_p0 = pnand %p2015_p3, %p2620_p6  ;;  %s2021_s14 = scalar_lea.vmem %s2020_s0, 4096 }
  0x77   : > { %p2022_p2 = scmp.lt.s32.totalorder %s2340_s13, %s2020_s0  ;;  %p2023_p4 = scmp.lt.s32.totalorder %s2021_s14, %s2014_s23 }
  0x78   : > { %p2018_p8 = pneg %p2017_p0 }
  0x79   : > { %p2024_p12 = por %p2023_p4, %p2022_p2 }
  0x7b   : > { %p2025_p11 = pnand %p2024_p12, %p2018_p8 }
  0x7d   : > { %2028 = shalt.err (!%p2025_p11)
}
  0x7e   : > { %1784 = dma.hbm_to_vmem [thread:$0]  (!%p2618_p9), %s2338_s30, 2048, %s2340_s13, %s2281_s2, %s2617_s16, %s2617_s16, %s2616_s20  }
  0x7f   : > { %p2621_p7 = scmp.ne.s32.totalorder %s2607_s28, 0 }
  0x80   : > { %p2622_p13 = scmp.eq.s32.totalorder (!%p2621_p7), %s2196_s21, 0 }
  0x81   : > { %429 = sbr.rel (%p2621_p7) target bundleno = 1337 (0x539), region = 64 }
  0x88   : > { %2072 = dma.done.wait (%p2622_p13), [#allocation4], 256   ;;  %p2623_p5 = pmov %p2622_p13 }
  0x8a   : > { %2074 = vsyncadd (%p2623_p5), [#allocation4], 4294967040  ;;  %p2624_p10 = pmov %p2623_p5 }
  0x8b   : > { %p2625_p1 = pmov %p2623_p5 }
  0x8c   : > { %2076 = dma.done.wait (%p2624_p10), [#allocation7], 2048  }
  0x8d   : > { %2078 = vsyncadd (%p2625_p1), [#allocation7], 4294965248  ;;  %s439_s15 = sand.u32 1, %s2196_s21   ;;  %s441_s2 = sand.u32 1, %s2093_s18  }
  0x8e   : > { %s1499_s20 = sshll.u32 %s441_s2, 8  ;;  %s440_s28 = scalar_lea.sflag [#allocation4], %s439_s15 }
  0x8f   : > { %s2381_s16 = scalar_lea.vmem [#allocation8], %s1499_s20  ;;  %p2626_p9 = scmp.ne.s32.totalorder %s2606_s27, 0 }
  0x91   : > { %2080 = dma.done.wait (%p2626_p9), %s440_s28, 6144  }
  0x92   : > { %2082 = vsyncadd (%p2626_p9), %s440_s28, 4294961152  ;;  %s1500_s17 = sshll.u32 %s441_s2, 7  ;;  %p505_p3 = scmp.lt.s32.totalorder %s2196_s21, 1 }
  0x93   : > { %s2410_s14 = scalar_lea.vmem [#allocation9], %s1500_s17  ;;  %p2627_p6 = scmp.ne.s32.totalorder %s2196_s21, 0 }
  0x94   : > { %s2389_s22 = scalar_select %p505_p3, %s2196_s21, 1 }
  0x95   : > { %523 = sbr.rel (%p2627_p6) target bundleno = 374 (0x176), region = 84  ;;  %v524_v0 = vld [vmem:[#allocation3] sm:$0xff] (!%p2627_p6)  ;;  %v525_v1 = vld [vmem:[#allocation3 + $0x8] sm:$0xff] (!%p2627_p6)  ;;  %s2628_s20 = sld [smem:[#allocation19_spill]] (!%p2627_p6)  ;;  %vm538_vm0 = vcmask (!%p2627_p6), 1043456   ;;  %vm531_vm1 = vcmask (!%p2627_p6), 31744  }
  0x96   : > { %s1501_s30 = sshll.u32 %s2389_s22, 1  ;;  %s515_s12 = scalar_lea.vmem %s2580_s9, %s2389_s22  ;;  %526 = vst [vmem:[#allocation10] sm:$0xff] (!%p2627_p6), %v524_v0  ;;  %527 = vst [vmem:[#allocation10 + $0x8] sm:$0xff] (!%p2627_p6), %v525_v1 }
  0x97   : > { %s2399_s26 = scalar_lea.vmem %s2577_s6, %s1501_s30  ;;  %s2404_s1 = scalar_lea.vmem %s2579_s8, %s1501_s30 }
  0x98   : > { %s518_s0 = scalar_lea.vmem %s2581_s10, %s2389_s22  ;;  %s2629_s24 = sld [smem:[#allocation18_spill]] (!%p2627_p6) }
  0x9b   : > { %v530_v2 = vld [vmem:[%s2628_s20] sm:$0xf] (!%p2627_p6) }
  0x9c   : > { %1606 = vmatprep.subr.msk.mxu0 %vm538_vm0, %v530_v2 }
  0x9d   : > { %1607 = vmatpush3.msk.msra.mxu0 %vm538_vm0, %v530_v2 }
  0x9e   : > { %v528_v3 = vld [vmem:[%s2629_s24] sm:$0xff]  ;;  %v529_v4 = vld [vmem:[%s2629_s24 + $0x8] sm:$0xff] }
  0x9f   : > { %1608 = vmatprep.mubr.msk.f32.mxu0 %vm531_vm1, %v528_v3 }
  0xa0   : > { %1609 = vmatmul.mubr.msk.f32.vlgmr.msra.gmra.mrb[0].mxu0 %vm531_vm1, %v529_v4 }
 0x173   : > { %v1610_v5 = vpop.f32.mrb[0].mxu0 }
 0x174   : > { %618 = vst [vmem:[#allocation2 + $0x8] sm:$0xff] %v1610_v5  ;;  %v608_v6 = vpop.f32.mrb[1].mxu0 }
 0x175   : > { %617 = vst [vmem:[#allocation2] sm:$0xff] %v608_v6 }
 0x176 PF: > { %v1836_v7 = vld [vmem:[%s2381_s16 + $0x4] ss:$16 sps:$4 sm:$0xff]   ;;  %v1838_v8 = vld [vmem:[%s2381_s16] ss:$16 sps:$4 sm:$0xff]   ;;  %v2111_v9 = vmov 0   ;;  %v2112_v27 = vmov 0.0   ;;  %v904_v4 = vlaneseq }
 0x177   : > { %848 = vmatprep.mubr.bf16.mxu0 %v2111_v9  ;;  %891 = vmatprep.mubr.bf16.mxu1 %v2111_v9  ;;  %v1839_v10 = vld [vmem:[%s2381_s16 + $0x24] ss:$16 sps:$4 sm:$0xff]   ;;  %v1841_v11 = vld [vmem:[%s2381_s16 + $0x20] ss:$16 sps:$4 sm:$0xff]   ;;  %v2443_v25 = vld [vmem:[#allocation10 + $0x8] sm:$0xff]  ;;  %vm2113_vm2 = vmmov 0  }
 0x178   : > { %816 = vmatprep.subr.bf16.mxu0 %v1836_v7  ;;  %v1842_v12 = vld [vmem:[%s2381_s16 + $0x44] ss:$16 sps:$4 sm:$0xff]   ;;  %v1844_v13 = vld [vmem:[%s2381_s16 + $0x40] ss:$16 sps:$4 sm:$0xff]   ;;  %v1861_v28 = vld [vmem:[%s2381_s16 + $0xc] ss:$16 sps:$4 sm:$0xff]  }
 0x179   : > { %817 = vmatpush1.bf16.msra.mxu0 %v1838_v8  ;;  %v1845_v14 = vld [vmem:[%s2381_s16 + $0x64] ss:$16 sps:$4 sm:$0xff]   ;;  %v1847_v15 = vld [vmem:[%s2381_s16 + $0x60] ss:$16 sps:$4 sm:$0xff]   ;;  %v1863_v29 = vld [vmem:[%s2381_s16 + $0x8] ss:$16 sps:$4 sm:$0xff]   ;;  %859 = vmatprep.subr.bf16.mxu1 %v1861_v28 }
 0x17a   : > { %818 = vmatprep.subr.bf16.mxu0 %v1839_v10  ;;  %v1848_v16 = vld [vmem:[%s2381_s16 + $0x84] ss:$16 sps:$4 sm:$0xff]   ;;  %v1850_v17 = vld [vmem:[%s2381_s16 + $0x80] ss:$16 sps:$4 sm:$0xff]   ;;  %v1864_v30 = vld [vmem:[%s2381_s16 + $0x2c] ss:$16 sps:$4 sm:$0xff]   ;;  %860 = vmatpush1.bf16.msra.mxu1 %v1863_v29 }
 0x17b   : > { %v1851_v18 = vld [vmem:[%s2381_s16 + $0xa4] ss:$16 sps:$4 sm:$0xff]   ;;  %v1853_v19 = vld [vmem:[%s2381_s16 + $0xa0] ss:$16 sps:$4 sm:$0xff]   ;;  %v1866_v31 = vld [vmem:[%s2381_s16 + $0x28] ss:$16 sps:$4 sm:$0xff]   ;;  %861 = vmatprep.subr.bf16.mxu1 %v1864_v30 }
 0x17c   : > { %v1854_v20 = vld [vmem:[%s2381_s16 + $0xc4] ss:$16 sps:$4 sm:$0xff]   ;;  %v1856_v21 = vld [vmem:[%s2381_s16 + $0xc0] ss:$16 sps:$4 sm:$0xff]   ;;  %v1867_v32 = vld [vmem:[%s2381_s16 + $0x4c] ss:$16 sps:$4 sm:$0xff]  }
 0x17d   : > { %819 = vmatpush1.bf16.msra.mxu0 %v1841_v11  ;;  %v1857_v22 = vld [vmem:[%s2381_s16 + $0xe4] ss:$16 sps:$4 sm:$0xff]   ;;  %v1859_v23 = vld [vmem:[%s2381_s16 + $0xe0] ss:$16 sps:$4 sm:$0xff]   ;;  %v1869_v33 = vld [vmem:[%s2381_s16 + $0x48] ss:$16 sps:$4 sm:$0xff]  }
 0x17e   : > { %820 = vmatprep.subr.bf16.mxu0 %v1842_v12  ;;  %v2441_v24 = vld [vmem:[#allocation10] sm:$0xff]  ;;  %862 = vmatpush1.bf16.msra.mxu1 %v1866_v31  ;;  %v1870_v34 = vld [vmem:[%s2381_s16 + $0x6c] ss:$16 sps:$4 sm:$0xff]   ;;  %v1872_v35 = vld [vmem:[%s2381_s16 + $0x68] ss:$16 sps:$4 sm:$0xff]   ;;  %v2475_v5 = vshrl.u32 %v904_v4, 7 }
 0x17f   : > { %v623_v26 = vpack.c.bf16 %v2443_v25, %v2441_v24  ;;  %863 = vmatprep.subr.bf16.mxu1 %v1867_v32  ;;  %v1873_v36 = vld [vmem:[%s2381_s16 + $0x8c] ss:$16 sps:$4 sm:$0xff]   ;;  %v1875_v37 = vld [vmem:[%s2381_s16 + $0x88] ss:$16 sps:$4 sm:$0xff]   ;;  %v981_v43 = vld [vmem:[#allocation6] sm:$0xff]  ;;  %s2630_s25 = sld [smem:[#allocation20_spill]] }
 0x180   : > { %v1876_v38 = vld [vmem:[%s2381_s16 + $0xac] ss:$16 sps:$4 sm:$0xff]   ;;  %v1878_v39 = vld [vmem:[%s2381_s16 + $0xa8] ss:$16 sps:$4 sm:$0xff]   ;;  %v983_v47 = vld [vmem:[#allocation6 + $0x10] sm:$0xff]  ;;  %v906_v6 = vsub.s32 0, %v2475_v5 }
 0x181   : > { %821 = vmatpush1.bf16.msra.mxu0 %v1844_v13  ;;  %v1879_v40 = vld [vmem:[%s2381_s16 + $0xcc] ss:$16 sps:$4 sm:$0xff]   ;;  %v1881_v41 = vld [vmem:[%s2381_s16 + $0xc8] ss:$16 sps:$4 sm:$0xff]   ;;  %v985_v50 = vld [vmem:[#allocation6 + $0x20] sm:$0xff]  ;;  %v910_v8 = vsub.s32 1, %v2475_v5 }
 0x182   : > { %822 = vmatprep.subr.bf16.mxu0 %v1845_v14  ;;  %864 = vmatpush1.bf16.msra.mxu1 %v1869_v33  ;;  %v1882_v42 = vld [vmem:[%s2381_s16 + $0xec] ss:$16 sps:$4 sm:$0xff]   ;;  %v1884_v45 = vld [vmem:[%s2381_s16 + $0xe8] ss:$16 sps:$4 sm:$0xff]   ;;  %v987_v53 = vld [vmem:[#allocation6 + $0x30] sm:$0xff]  ;;  %vm936_vm3 = vcmask 130048  }
 0x183   : > { %865 = vmatprep.subr.bf16.mxu1 %v1870_v34  ;;  %v982_v44 = vld [vmem:[#allocation6 + $0x8] sm:$0xff]  ;;  %v984_v48 = vld [vmem:[#allocation6 + $0x18] sm:$0xff]  ;;  %v989_v56 = vld [vmem:[#allocation6 + $0x40] sm:$0xff]  ;;  %s2114_s22 = smov [#allocation10]   ;;  %p1790_p0 = scmp.eq.s32.totalorder %s2196_s21, 1 }
 0x184   : > { %v2463_v46 = vpack.c.bf16 %v982_v44, %v981_v43  ;;  %v2466_v49 = vpack.c.bf16 %v984_v48, %v983_v47  ;;  %v986_v51 = vld [vmem:[#allocation6 + $0x28] sm:$0xff]  ;;  %v988_v54 = vld [vmem:[#allocation6 + $0x38] sm:$0xff]  ;;  %v991_v59 = vld [vmem:[#allocation6 + $0x50] sm:$0xff] }
 0x185   : > { %823 = vmatpush1.bf16.msra.mxu0 %v1847_v15  ;;  %v2470_v52 = vpack.c.bf16 %v986_v51, %v985_v50  ;;  %v1699_v55 = vpack.c.bf16 %v988_v54, %v987_v53  ;;  %v990_v57 = vld [vmem:[#allocation6 + $0x48] sm:$0xff]  ;;  %v992_v60 = vld [vmem:[#allocation6 + $0x58] sm:$0xff]  ;;  %v993_v62 = vld [vmem:[#allocation6 + $0x60] sm:$0xff] }
 0x186   : > { %824 = vmatprep.subr.bf16.mxu0 %v1848_v16  ;;  %866 = vmatpush1.bf16.msra.mxu1 %v1872_v35  ;;  %v1703_v58 = vpack.c.bf16 %v990_v57, %v989_v56  ;;  %v1707_v61 = vpack.c.bf16 %v992_v60, %v991_v59  ;;  %v994_v63 = vld [vmem:[#allocation6 + $0x68] sm:$0xff]  ;;  %v995_v1 = vld [vmem:[#allocation6 + $0x70] sm:$0xff]  ;;  %v996_v2 = vld [vmem:[#allocation6 + $0x78] sm:$0xff] }
 0x187   : > { %867 = vmatprep.subr.bf16.mxu1 %v1873_v36  ;;  %v1711_v0 = vpack.c.bf16 %v994_v63, %v993_v62  ;;  %v1715_v3 = vpack.c.bf16 %v996_v2, %v995_v1  ;;  %v902_v7 = vld [vmem:[%s2399_s26] sm:$0x3]  ;;  %v2486_v28 = vld [vmem:[#allocation2 + $0x8] sm:$0xff]  ;;  %v1896_v48 = vld [vmem:[%s2410_s14 + $0x34] ss:$8 sps:$4 sm:$0xff]  }
 0x188   : > { %v907_v10 = vrot.slane %v902_v7, %v906_v6  ;;  %v911_v11 = vrot.slane %v902_v7, %v910_v8  ;;  %v1860_v35 = vld [vmem:[%s2630_s25] sm:$0xff]   ;;  %v1906_v56 = vld [vmem:[%s2410_s14 + $0x70] ss:$8 sps:$4 sm:$0xff]  }
 0x189   : > { %825 = vmatpush1.bf16.msra.mxu0 %v1850_v17  ;;  %v1887_v36 = vld [vmem:[%s2410_s14 + $0x4] ss:$8 sps:$4 sm:$0xff]   ;;  %v1891_v47 = vld [vmem:[%s2410_s14 + $0x20] ss:$8 sps:$4 sm:$0xff]  }
 0x18a   : > { %826 = vmatprep.subr.bf16.mxu0 %v1851_v18  ;;  %868 = vmatpush1.bf16.msra.mxu1 %v1875_v37  ;;  %v1899_v50 = vld [vmem:[%s2410_s14 + $0x44] ss:$8 sps:$4 sm:$0xff]   ;;  %v1897_v51 = vld [vmem:[%s2410_s14 + $0x40] ss:$8 sps:$4 sm:$0xff]  }
 0x18b   : > { %869 = vmatprep.subr.bf16.mxu1 %v1876_v38  ;;  %v1885_v38 = vld [vmem:[%s2410_s14] ss:$8 sps:$4 sm:$0xff]   ;;  %v1905_v53 = vld [vmem:[%s2410_s14 + $0x64] ss:$8 sps:$4 sm:$0xff]  }
 0x18c   : > { %v1903_v54 = vld [vmem:[%s2410_s14 + $0x60] ss:$8 sps:$4 sm:$0xff]  }
 0x18d   : > { %827 = vmatpush1.bf16.msra.mxu0 %v1853_v19 }
 0x18e   : > { %828 = vmatprep.subr.bf16.mxu0 %v1854_v20  ;;  %870 = vmatpush1.bf16.msra.mxu1 %v1878_v39 }
 0x18f   : > { %871 = vmatprep.subr.bf16.mxu1 %v1879_v40 }
 0x191   : > { %829 = vmatpush1.bf16.msra.mxu0 %v1856_v21 }
 0x192   : > { %830 = vmatprep.subr.bf16.mxu0 %v1857_v22  ;;  %872 = vmatpush1.bf16.msra.mxu1 %v1881_v41  ;;  %v2484_v22 = vld [vmem:[#allocation2] sm:$0xff]  ;;  %v1890_v41 = vld [vmem:[%s2410_s14 + $0x14] ss:$8 sps:$4 sm:$0xff]  }
 0x193   : > { %873 = vmatprep.subr.bf16.mxu1 %v1882_v42 }
 0x195   : > { %831 = vmatpush1.bf16.msra.mxu0 %v1859_v23 }
 0x196   : > { %1611 = vmatprep.subr.bf16.mxu0 %v2112_v27  ;;  %874 = vmatpush1.bf16.msra.mxu1 %v1884_v45  ;;  %v1888_v45 = vld [vmem:[%s2410_s14 + $0x10] ss:$8 sps:$4 sm:$0xff]  }
 0x197   : > { %1688 = vmatprep.subr.bf16.mxu1 %v2463_v46 }
 0x198   : > { %849 = vmatmul.mubr.bf16.vlgmr.msra.gmra.mrb[0].mxu0 %v623_v26 }
 0x199   : > { %1613 = vmatprep.mubr.msk.bf16.mxu0 %vm2113_vm2, %v2112_v27  ;;  %892 = vmatmul.mubr.bf16.vlgmr.msra.gmra.mrb[0].mxu1 %v623_v26 }
 0x19a   : > { %1690 = vmatpush3.bf16.msra.mxu1 %v2463_v46 }
 0x19b   : > { %1692 = vmatprep.subr.bf16.mxu1 %v2466_v49 }
 0x19e   : > { %1694 = vmatpush3.bf16.msra.mxu1 %v2466_v49 }
 0x19f   : > { %1696 = vmatprep.subr.bf16.mxu1 %v2470_v52 }
 0x1a2   : > { %1698 = vmatpush3.bf16.msra.mxu1 %v2470_v52 }
 0x1a3   : > { %1700 = vmatprep.subr.bf16.mxu1 %v1699_v55 }
 0x1a6   : > { %1702 = vmatpush3.bf16.msra.mxu1 %v1699_v55 }
 0x1a7   : > { %1704 = vmatprep.subr.bf16.mxu1 %v1703_v58 }
 0x1aa   : > { %1706 = vmatpush3.bf16.msra.mxu1 %v1703_v58 }
 0x1ab   : > { %1708 = vmatprep.subr.bf16.mxu1 %v1707_v61 }
 0x1ae   : > { %1710 = vmatpush3.bf16.msra.mxu1 %v1707_v61 }
 0x1af   : > { %1712 = vmatprep.subr.bf16.mxu1 %v1711_v0 }
 0x1b2   : > { %1714 = vmatpush3.bf16.msra.mxu1 %v1711_v0 }
 0x1b3   : > { %1716 = vmatprep.subr.bf16.mxu1 %v1715_v3 }
 0x1b6   : > { %1718 = vmatpush3.bf16.msra.mxu1 %v1715_v3 }
 0x1b7   : > { %1276 = vmatprep.subr.bf16.mxu1 %v1887_v36 }
 0x26b   : > { %v850_v12 = vpop.f32.mrb[0].mxu0 }
 0x26c   : > { %v914_v13 = vadd.f32 %v907_v10, %v850_v12  ;;  %v852_v14 = vpop.f32.mrb[1].mxu0 }
 0x26d   : > { %v915_v15 = vadd.f32 %v911_v11, %v852_v14  ;;  %v854_v16 = vpop.f32.mrb[2].mxu0  ;;  %v1542_v14 = vld [vmem:[%s518_s0] ss:$0 sm:$0xff] }
 0x26e   : > { %v918_v17 = vmax.f32 %v914_v13, 0.0  ;;  %v916_v18 = vadd.f32 %v907_v10, %v854_v16  ;;  %v856_v19 = vpop.f32.mrb[3].mxu0  ;;  %v1541_v10 = vld [vmem:[%s515_s12] ss:$0 sm:$0xff]  ;;  %s1351_s12 = sshll.u32 %s2114_s22, 4  ;;  %s1352_s12 = int_to_ptr.vmem [resolvable:$true] %s1351_s12 }
 0x26f   : > { %v919_v20 = vmax.f32 %v915_v15, 0.0  ;;  %v917_v21 = vadd.f32 %v911_v11, %v856_v19  ;;  %p2036_p12 = scmp.lt.s32.totalorder %s1352_s12, %s1352_s12 }
 0x270   : > { %v920_v23 = vmax.f32 %v916_v18, 0.0 }
 0x271   : > { %v922_v26 = vsub.f32 %v919_v20, %v918_v17  ;;  %v921_v27 = vmax.f32 %v917_v21, 0.0  ;;  %v1319_v20 = vld [vmem:[%s2404_s1] sm:$0x3]  ;;  %s2029_s1 = scalar_lea.vmem %s1352_s12, 256 }
 0x272   : > { %v1324_v21 = vrot.slane %v1319_v20, %v906_v6  ;;  %p2030_p8 = scmp.ne.s32.totalorder %s1352_s12, %s2029_s1  ;;  %p2037_p11 = scmp.lt.s32.totalorder %s2029_s1, %s2029_s1 }
 0x273   : > { %v924_v29 = vmul.f32 %v922_v26, %v2484_v22  ;;  %v923_v30 = vsub.f32 %v921_v27, %v920_v23 }
 0x274   : > { %p2031_p2 = pnand %p2030_p8, %p1790_p0  ;;  %p2038_p7 = por %p2037_p11, %p2036_p12 }
 0x275   : > { %v926_v31 = vadd.f32 %v924_v29, %v918_v17  ;;  %v925_v32 = vmul.f32 %v923_v30, %v2486_v28 }
 0x276   : > { %p2032_p4 = pneg %p2031_p2 }
 0x277   : > { %v927_v33 = vadd.f32 %v925_v32, %v920_v23  ;;  %v1328_v23 = vrot.slane %v1319_v20, %v910_v8 }
 0x278   : > { %p2039_p13 = pnand %p2038_p7, %p2032_p4 }
 0x279   : > { %v930_v34 = vpack.c.bf16 %v927_v33, %v926_v31 }
 0x27b   : > { %1612 = vmatpush3.bf16.msra.mxu0 %v930_v34 }
 0x27c   : > { %1720 = vmatprep.subr.bf16.mxu0 %v2463_v46 }
 0x27e   : > { %1614 = vmatmul.mubr.msk.bf16.vlgmr.msra.gmra.mrb[4].mxu0 %vm936_vm3, %v1860_v35 }
 0x27f   : > { %1722 = vmatpush3.bf16.msra.mxu0 %v2463_v46  ;;  %v1893_v46 = vld [vmem:[%s2410_s14 + $0x24] ss:$8 sps:$4 sm:$0xff]  }
 0x280   : > { %1724 = vmatprep.subr.bf16.mxu0 %v2466_v49 }
 0x283   : > { %1726 = vmatpush3.bf16.msra.mxu0 %v2466_v49  ;;  %v1894_v49 = vld [vmem:[%s2410_s14 + $0x30] ss:$8 sps:$4 sm:$0xff]  }
 0x284   : > { %1728 = vmatprep.subr.bf16.mxu0 %v2470_v52 }
 0x287   : > { %1730 = vmatpush3.bf16.msra.mxu0 %v2470_v52  ;;  %v1900_v52 = vld [vmem:[%s2410_s14 + $0x50] ss:$8 sps:$4 sm:$0xff]  }
 0x288   : > { %1732 = vmatprep.subr.bf16.mxu0 %v1699_v55 }
 0x28b   : > { %1734 = vmatpush3.bf16.msra.mxu0 %v1699_v55  ;;  %v1908_v55 = vld [vmem:[%s2410_s14 + $0x74] ss:$8 sps:$4 sm:$0xff]  }
 0x28c   : > { %1736 = vmatprep.subr.bf16.mxu0 %v1703_v58 }
 0x28f   : > { %1738 = vmatpush3.bf16.msra.mxu0 %v1703_v58 }
 0x290   : > { %1740 = vmatprep.subr.bf16.mxu0 %v1707_v61 }
 0x293   : > { %1742 = vmatpush3.bf16.msra.mxu0 %v1707_v61 }
 0x294   : > { %1744 = vmatprep.subr.bf16.mxu0 %v1711_v0 }
 0x297   : > { %1746 = vmatpush3.bf16.msra.mxu0 %v1711_v0 }
 0x298   : > { %1748 = vmatprep.subr.bf16.mxu0 %v1715_v3 }
 0x29b   : > { %1750 = vmatpush3.bf16.msra.mxu0 %v1715_v3 }
 0x351   : > { %v974_v37 = vpop.f32.mrb[4].mxu0 }
 0x352   : > { %v1072_v39 = vmul.f32 %v974_v37, %v974_v37  ;;  %v1615_v40 = vpop.f32.mrb[5].mxu0  ;;  %1649 = vmatprep.mubr.f32.mxu1 %v974_v37 }
 0x353   : > { %v977_v42 = vpop.f32.mrb[6].mxu0 }
 0x354   : > { %v1073_v43 = vmul.f32 %v977_v42, %v977_v42  ;;  %1650 = vmatmul.mubr.f32.vlgmr.msra.gmra.mrb[4].mxu1 %v977_v42  ;;  %1684 = vmatprep.mubr.f32.mxu0 %v1072_v39  ;;  %v1616_v44 = vpop.f32.mrb[7].mxu0 }
 0x355   : > { %1277 = vmatpush1.bf16.msra.mxu1 %v1885_v38  ;;  %1308 = vmatprep.mubr.bf16.mxu1 %v2111_v9  ;;  %v1902_v9 = vld [vmem:[%s2410_s14 + $0x54] ss:$8 sps:$4 sm:$0xff]  }
 0x356   : > { %1685 = vmatmul.mubr.f32.vlgmr.msra.gmra.mrb[8].mxu0 %v1073_v43  ;;  %1278 = vmatprep.subr.bf16.mxu1 %v1890_v41 }
 0x359   : > { %1279 = vmatpush1.bf16.msra.mxu1 %v1888_v45 }
 0x35a   : > { %1280 = vmatprep.subr.bf16.mxu1 %v1893_v46 }
 0x35d   : > { %1281 = vmatpush1.bf16.msra.mxu1 %v1891_v47 }
 0x35e   : > { %1282 = vmatprep.subr.bf16.mxu1 %v1896_v48 }
 0x361   : > { %1283 = vmatpush1.bf16.msra.mxu1 %v1894_v49 }
 0x362   : > { %1284 = vmatprep.subr.bf16.mxu1 %v1899_v50 }
 0x365   : > { %1285 = vmatpush1.bf16.msra.mxu1 %v1897_v51 }
 0x366   : > { %1286 = vmatprep.subr.bf16.mxu1 %v1902_v9 }
 0x369   : > { %1287 = vmatpush1.bf16.msra.mxu1 %v1900_v52 }
 0x36a   : > { %1288 = vmatprep.subr.bf16.mxu1 %v1905_v53 }
 0x36d   : > { %1289 = vmatpush1.bf16.msra.mxu1 %v1903_v54 }
 0x36e   : > { %1290 = vmatprep.subr.bf16.mxu1 %v1908_v55 }
 0x371   : > { %1291 = vmatpush1.bf16.msra.mxu1 %v1906_v56 }
 0x427   : > { %v1651_v57 = vpop.f32.mrb[4].mxu1 }
 0x428   : > { %v1150_v58 = vmul.f32 %v1651_v57, %v1651_v57  ;;  %v1154_v59 = vsub.f32 %v977_v42, %v1651_v57  ;;  %v1063_v60 = vpop.f32.mrb[5].mxu1 }
 0x429   : > { %v1149_v61 = vmul.f32 %v1063_v60, %v1063_v60  ;;  %v1153_v62 = vsub.f32 %v974_v37, %v1063_v60  ;;  %v1686_v63 = vpop.f32.mrb[8].mxu0 }
 0x42a   : > { %v1152_v0 = vsub.f32 %v1686_v63, %v1150_v58  ;;  %v1140_v1 = vpop.f32.mrb[9].mxu0 }
 0x42b   : > { %v1151_v2 = vsub.f32 %v1140_v1, %v1149_v61 }
 0x42c   : > { %v1156_v3 = vadd.f32 1e-05, %v1152_v0 }
 0x42d   : > { %v1155_v4 = vadd.f32 1e-05, %v1151_v2 }
 0x42e   : > { %1909 = vrsqrt.f32 %v1156_v3 }
 0x42f   : > { %1911 = vrsqrt.f32 %v1155_v4 }
 0x438   : > { %v1910_v7 = vpop.eup %1909 }
 0x439   : > { %v1912_v11 = vpop.eup %1911  ;;  %v1160_v12 = vmul.f32 %v1910_v7, %v1154_v59 }
 0x43a   : > { %v1159_v13 = vmul.f32 %v1912_v11, %v1153_v62 }
 0x43b   : > { %v1169_v15 = vmul.f32 %v1541_v10, %v1160_v12 }
 0x43c   : > { %v1168_v16 = vmul.f32 %v1541_v10, %v1159_v13 }
 0x43d   : > { %v1178_v17 = vadd.f32 %v1542_v14, %v1169_v15 }
 0x43e   : > { %v1177_v18 = vadd.f32 %v1542_v14, %v1168_v16 }
 0x440   : > { %v1179_v19 = vpack.c.bf16 %v1178_v17, %v1177_v18 }
 0x442   : > { %1309 = vmatmul.mubr.bf16.vlgmr.msra.gmra.mrb[0].mxu1 %v1179_v19 }
 0x515   : > { %v1310_v26 = vpop.f32.mrb[0].mxu1 }
 0x516   : > { %v1331_v27 = vadd.f32 %v1324_v21, %v1310_v26  ;;  %v1312_v29 = vpop.f32.mrb[1].mxu1 }
 0x517   : > { %v1332_v30 = vadd.f32 %v1328_v23, %v1312_v29  ;;  %v1314_v31 = vpop.f32.mrb[2].mxu1 }
 0x518   : > { %v1333_v32 = vadd.f32 %v1324_v21, %v1314_v31  ;;  %v1316_v33 = vpop.f32.mrb[3].mxu1 }
 0x519   : > { %v1335_v34 = vsub.f32 %v1332_v30, %v1331_v27  ;;  %v1334_v35 = vadd.f32 %v1328_v23, %v1316_v33 }
 0x51b   : > { %v1337_v36 = vmul.f32 %v1335_v34, %v2484_v22  ;;  %v1336_v37 = vsub.f32 %v1334_v35, %v1333_v32 }
 0x51d   : > { %v1339_v38 = vadd.f32 %v1337_v36, %v1331_v27  ;;  %v1338_v6 = vmul.f32 %v1336_v37, %v2486_v28 }
 0x51f   : > { %v1341_v5 = vadd.f32 %v1339_v38, %v2441_v24  ;;  %v1340_v8 = vadd.f32 %v1338_v6, %v1333_v32 }
 0x521   : > { %1343 = vst [vmem:[#allocation10] sm:$0xff] %v1341_v5  ;;  %v1342_v39 = vadd.f32 %v1340_v8, %v2443_v25 }
 0x523   : > { %1344 = vst [vmem:[#allocation10 + $0x8] sm:$0xff] %v1342_v39 }
 0x524   : > { %2042 = shalt.err (!%p2039_p13)
}
 0x525   : > { %s2631_s14 = sld [smem:[#allocation21_spill]] }
 0x52b   : > { %s2043_s15 = scalar_lea.hbm %s2631_s14, 256 }
 0x52c   : > { %p2044_p5 = scmp.ne.s32.totalorder %s2631_s14, %s2043_s15  ;;  %p2049_p9 = scmp.lt.u32.totalorder %s2043_s15, %s2631_s14 }
 0x52e   : > { %p2045_p10 = pnand %p2044_p5, %p1790_p0 }
 0x530   : > { %p2046_p1 = pneg %p2045_p10 }
 0x532   : > { %p2051_p3 = pnand %p2049_p9, %p2046_p1 }
 0x534   : > { %2054 = shalt.err (!%p2051_p3)
}
 0x535   : > { %s2115_s17 = smov 128   ;;  %s2116_s13 = smov 8  }
 0x536   : > { %1768 = dma.vmem_to_hbm [thread:$0]  (%p1790_p0), %s1352_s12, 256, %s2631_s14, [#allocation5], %s2115_s17, %s2115_s17, %s2116_s13  }
 0x537   : > { %2084 = dma.done.wait (%p1790_p0), [#allocation5], 256  }
 0x538   : > { %2086 = vsyncadd (%p1790_p0), [#allocation5], 4294967040 }
 0x539 PF: > { %s2632_s20 = sld [smem:[#allocation15_spill]]  ;;  %s2633_s25 = sld [smem:[#allocation16_spill]] }
 0x53a   : > { %s2634_s17 = smov %s2093_s18  ;;  %s2635_s18 = smov %s2097_s19 }
 0x53f   : > { %p21_p6 = scmp.ge.s32.totalorder %s2632_s20, 4   ;;  %s2636_s19 = smov %s2633_s25 }
 0x541   :  { %23 = sbr.rel (!%p21_p6) target bundleno = 10 (0xa), region = 135 }
 0x548   :  { %1367 = vsyncpa [#allocation4], 1 }
 0x549   :  { %1369 = vsyncpa [#allocation4 + $0x1], 1 }
 0x54a   :  { %1370 = vsyncpa [#allocation7], 1 }
 0x54b   :  { %1371 = vsyncpa [#allocation5], 1 }
 0x54c   :  { %1373 = vsyncpa [#allocation5 + $0x1], 1 }

</bundles_post_ra>
